<compile_context>
chip_gen: v7x
topology: tpu7x:2x2x1
jax: 0.10.0
libtpu: 0.0.40
codegen_flags: <defaults>
</compile_context>

<pallas_src>
import numpy as np
import jax
import jax.numpy as jnp
from jax.experimental import pallas as pl
from jax.experimental.pallas import tpu as pltpu

TB_MAX = 128                       # max batch tile per grid step
IN_H, IN_W, IN_W_PAD = 28, 28, 32  # MNIST-like input; W lane-padded 28 -> 32
PAD1, K1 = 4, 5                    # conv1 padding / kernel size
_HO = (16, 8, 4, 2)                # conv output spatial sizes for a 28x28 input


# ----------------------------------------------------------------------------
# Fused Pallas kernel: conv1..conv4 (+SiLU) -> fc1 (+SiLU) -> fc2, one batch
# tile of TB samples per grid step.  All intermediates stay in VMEM/vregs.
# ----------------------------------------------------------------------------
def _cnn_fused_kernel(x_ref, s1_ref, b1_ref, s2_ref, b2_ref, s3_ref, b3_ref,
                      s4_ref, b4_ref, f1_ref, fb1_ref, f2_ref, fb2_ref,
                      o_ref, p2_ref, p3_ref, p4_ref):
    tb = x_ref.shape[2]

    def silu(v):
        # sigmoid = 1 / (1 + exp(-v)): exp + approx reciprocal both go to EUP.
        return v * pl.reciprocal(1.0 + jnp.exp(-v), approx=True)

    def store_padded(p_ref, y, ho):
        """Write conv output (ho*tb, n) into rows [1, 1+ho) of the padded
        scratch and zero the border rows (top row is read as H padding;
        bottom row only exists so the H extent stays even)."""
        n = p_ref.shape[-1]
        p_ref[0] = jnp.zeros((tb, n), p_ref.dtype)
        p_ref[p_ref.shape[0] - 1] = jnp.zeros((tb, n), p_ref.dtype)
        p_ref[pl.ds(1, ho)] = y.astype(p_ref.dtype).reshape(ho, tb, n)

    def conv3x3(p_ref, s_ref, b_ref, ho):
        """Stride-2 3x3 conv + bias + SiLU from a padded (hp, tb, kin) scratch.
        W taps / W padding / channel mixing / bias tiling live in the stacked
        banded matrix s_ref (3*kin, n); the 3 H taps become a lane-concat of
        three slabs taken via a free even/odd split of the leading H axis."""
        hp, _, kin = p_ref.shape
        a = p_ref[...].reshape(hp // 2, 2, tb, kin)
        op = jnp.concatenate(
            [a[d // 2: d // 2 + ho, d % 2] for d in range(3)],
            axis=-1).reshape(ho * tb, 3 * kin)
        acc = jnp.dot(op, s_ref[...], preferred_element_type=jnp.float32)
        return silu(acc + b_ref[...])                     # (ho*tb, n) f32

    # conv1: the 5 H taps were pre-gathered in the wrapper (im2row), so this
    # is a single K=160 matmul against the stacked banded weights.
    op1 = x_ref[0].reshape(_HO[0] * tb, x_ref.shape[-1])  # (16*tb, 160) bf16
    y1 = silu(jnp.dot(op1, s1_ref[...], preferred_element_type=jnp.float32)
              + b1_ref[...])                              # (16*tb, 256) f32
    store_padded(p2_ref, y1, _HO[0])

    store_padded(p3_ref, conv3x3(p2_ref, s2_ref, b2_ref, _HO[1]), _HO[1])
    store_padded(p4_ref, conv3x3(p3_ref, s3_ref, b3_ref, _HO[2]), _HO[2])
    y4 = conv3x3(p4_ref, s4_ref, b4_ref, _HO[3])          # (2*tb, 128) f32

    # fc1 (+ SiLU): nn.Flatten's NCHW permutation is baked into f1_ref, which
    # is stacked over the 2 spatial rows -> a single K=256 matmul.
    a4 = y4.astype(jnp.bfloat16).reshape(2, tb, y4.shape[-1])
    op5 = jnp.concatenate([a4[0], a4[1]], axis=-1)        # (tb, 256) bf16
    h = silu(jnp.dot(op5, f1_ref[...], preferred_element_type=jnp.float32)
             + fb1_ref[...])                              # (tb, 64) f32

    # fc2 has N=1: VPU multiply + lane reduction instead of a 1-lane MXU matmul.
    out = jnp.sum(h * f2_ref[...], axis=-1) + fb2_ref[...]   # -> (1, tb)
    o_ref[...] = out.astype(o_ref.dtype)


# ----------------------------------------------------------------------------
# Parameters.  init_params creates PyTorch-layout tensors (Conv2d: OIHW,
# Linear: (out, in)); prepare_params converts them once into the kernel layout
# (K-stacked block-banded conv matrices, tiled biases, flatten-permuted fc1).
# Real checkpoint weights loaded into the same dict would map identically.
# ----------------------------------------------------------------------------
def init_params(key, hidden_features=32, out_dim=1):
    c1, c2, c3 = hidden_features // 2, hidden_features, hidden_features * 2
    ks = jax.random.split(key, 12)

    def w(k, shape, fan_in):
        return jax.random.normal(k, shape, jnp.float32) / np.sqrt(float(fan_in))

    def b(k, shape):
        return 0.01 * jax.random.normal(k, shape, jnp.float32)

    return {
        "conv1_w": w(ks[0], (c1, 1, 5, 5), 25),        "conv1_b": b(ks[1], (c1,)),
        "conv2_w": w(ks[2], (c2, c1, 3, 3), 9 * c1),   "conv2_b": b(ks[3], (c2,)),
        "conv3_w": w(ks[4], (c3, c2, 3, 3), 9 * c2),   "conv3_b": b(ks[5], (c3,)),
        "conv4_w": w(ks[6], (c3, c3, 3, 3), 9 * c3),   "conv4_b": b(ks[7], (c3,)),
        "fc1_w":  w(ks[8], (c3, c3 * 4), c3 * 4),      "fc1_b": b(ks[9], (c3,)),
        "fc2_w":  w(ks[10], (out_dim, c3), c3),        "fc2_b": b(ks[11], (out_dim,)),
    }


def prepare_params(params, w_dtype=jnp.bfloat16):
    def band(w_oihw, wi, pad, k_rows=None):
        # Block-banded matrix for a stride-2 conv, stacked over the KH taps:
        # rows = (tap, w_in, cin), cols = (w_out, cout).  Out-of-range W
        # positions (W zero-padding / lane padding) simply get zero rows.
        w = np.asarray(w_oihw, np.float32).transpose(2, 3, 1, 0)  # (KH,KW,Cin,Cout)
        kh, kw, cin, cout = w.shape
        wo = (wi + 2 * pad - kw) // 2 + 1
        rows = (k_rows if k_rows is not None else wi) * cin
        s = np.zeros((kh, rows, wo * cout), np.float32)
        for di in range(kh):
            for o in range(wo):
                for dj in range(kw):
                    w_in = 2 * o + dj - pad
                    if 0 <= w_in < wi:
                        s[di, w_in * cin:(w_in + 1) * cin,
                          o * cout:(o + 1) * cout] = w[di, dj]
        # Stack taps along the contraction axis (matches the kernel's
        # lane-concat of the KH tap slabs: tap-major, (w_in, cin)-minor).
        return s.reshape(kh * rows, wo * cout), wo, cout

    def tiled_bias(b, wo):
        return np.tile(np.asarray(b, np.float32), wo).reshape(1, -1)

    s1, wo1, _ = band(params["conv1_w"], IN_W, PAD1, k_rows=IN_W_PAD)  # (160,256)
    s2, wo2, _ = band(params["conv2_w"], wo1, 1)                       # (768,256)
    s3, wo3, _ = band(params["conv3_w"], wo2, 1)                       # (768,256)
    s4, wo4, c4 = band(params["conv4_w"], wo3, 1)                      # (768,128)
    b1 = tiled_bias(params["conv1_b"], wo1)
    b2 = tiled_bias(params["conv2_b"], wo2)
    b3 = tiled_bias(params["conv3_b"], wo3)
    b4 = tiled_bias(params["conv4_b"], wo4)

    # fc1: fold nn.Flatten's (c, h, w) ordering into the weight; rows follow
    # the kernel operand order (h major, then the conv4 (w, c) lane order).
    w1 = np.asarray(params["fc1_w"], np.float32)                   # (64, 256)
    f1 = (w1.reshape(w1.shape[0], c4, wo4, wo4)                    # (j, c, h, w)
          .transpose(2, 3, 1, 0)                                   # (h, w, c, j)
          .reshape(wo4 * wo4 * c4, w1.shape[0]))                   # (256, 64)
    fb1 = np.asarray(params["fc1_b"], np.float32).reshape(1, -1)
    f2 = np.asarray(params["fc2_w"], np.float32).reshape(1, -1)    # (1, 64)
    fb2 = np.asarray(params["fc2_b"], np.float32).reshape(1, 1)

    wd = lambda a: jnp.asarray(a, w_dtype)       # matmul operands -> bf16
    fd = lambda a: jnp.asarray(a, jnp.float32)   # bias / VPU path -> f32
    return (wd(s1), fd(b1), wd(s2), fd(b2), wd(s3), fd(b3), wd(s4), fd(b4),
            wd(f1), fd(fb1), fd(f2), fd(fb2))


# ----------------------------------------------------------------------------
# pallas_call wrapper
# ----------------------------------------------------------------------------
def _const_index_map(ndim):
    return lambda i, _n=ndim: (0,) * _n


def _pick_batch_tile(batch):
    """Batch tile: multiple of 8, <= TB_MAX, and >= 2 grid steps once the batch
    is large enough so v7x's two TensorCores both get work.  Batches that are
    not a multiple of the tile compute (and discard) padded samples."""
    bp8 = -(-batch // 8) * 8
    if bp8 <= 64:
        return bp8
    return min(TB_MAX, -(-(bp8 // 2) // 8) * 8)


def _cost_estimate(nT, tb, x_tiled, kparams):
    # (ho, K, N) of the single wide-K matmul per conv layer.
    conv_dims = ((_HO[0], K1 * IN_W_PAD, 256), (_HO[1], 768, 256),
                 (_HO[2], 768, 256), (_HO[3], 768, 128))
    flops = sum(2 * ho * tb * k * n for ho, k, n in conv_dims)
    flops += 2 * tb * 256 * 64 + 2 * tb * 64                 # fc1 + fc2
    silu_elems = sum(ho * tb * n for ho, _, n in conv_dims) + tb * 64
    trans = 2 * silu_elems                                    # exp + reciprocal
    bytes_accessed = (int(x_tiled.size) * x_tiled.dtype.itemsize
                      + sum(int(a.size) * a.dtype.itemsize for a in kparams)
                      + nT * tb * 4)
    return pl.CostEstimate(flops=int(flops) * nT,
                           transcendentals=int(trans) * nT,
                           bytes_accessed=int(bytes_accessed))


def cnn_forward(kparams, x, batch_tile=None):
    """x: (B, 1, 28, 28) f32 NCHW -> (B,) f32 (matches CNNModel.forward)."""
    B = x.shape[0]
    assert x.shape[1:] == (1, IN_H, IN_W), x.shape
    tb = batch_tile if batch_tile is not None else _pick_batch_tile(B)
    nT = -(-B // tb)
    Bp = nT * tb
    k1w = K1 * IN_W_PAD                                       # conv1 K = 160

    # Pad batch, H (conv1 padding=4 -> 36 rows) and W (lane pad 28 -> 32; the
    # extra lanes hit zero rows of the banded conv1 weights), then gather the
    # 5 H taps per conv1 output row (im2row on the tiny raw input) so conv1 is
    # a single wide-K matmul in-kernel.
    xb = x.reshape(B, IN_H, IN_W)
    xb = jnp.pad(xb, ((0, Bp - B), (PAD1, PAD1), (0, IN_W_PAD - IN_W)))
    rows = 2 * np.arange(_HO[0])[:, None] + np.arange(K1)[None, :]   # (16, 5)
    xg = xb[:, rows, :].reshape(Bp, _HO[0], k1w)                      # (Bp,16,160)
    xg = xg.reshape(nT, tb, _HO[0], k1w).transpose(0, 2, 1, 3)        # (nT,16,tb,160)
    xg = xg.astype(jnp.bfloat16)

    in_specs = [pl.BlockSpec((1, _HO[0], tb, k1w), lambda i: (i, 0, 0, 0))]
    in_specs += [pl.BlockSpec(a.shape, _const_index_map(a.ndim)) for a in kparams]

    # Persistent padded scratch for the conv2..conv4 inputs (H pad rows).
    scratch = [pltpu.VMEM((_HO[0] + 2, tb, kparams[1].shape[-1]), jnp.bfloat16),
               pltpu.VMEM((_HO[1] + 2, tb, kparams[3].shape[-1]), jnp.bfloat16),
               pltpu.VMEM((_HO[2] + 2, tb, kparams[5].shape[-1]), jnp.bfloat16)]

    out = pl.pallas_call(
        _cnn_fused_kernel,
        out_shape=jax.ShapeDtypeStruct((nT, tb), jnp.float32),
        grid_spec=pltpu.PrefetchScalarGridSpec(
            num_scalar_prefetch=0,
            grid=(nT,),
            in_specs=in_specs,
            out_specs=pl.BlockSpec((1, tb), lambda i: (i, 0)),
            scratch_shapes=scratch),
        compiler_params=pltpu.CompilerParams(
            dimension_semantics=("parallel",),
            vmem_limit_bytes=32 * 1024 * 1024),
        cost_estimate=_cost_estimate(nT, tb, xg, kparams),
    )(xg, *kparams)

    return out.reshape(Bp)[:B]


# ----------------------------------------------------------------------------
# Pure-JAX reference (f32) for a correctness check.
# ----------------------------------------------------------------------------
def reference_forward(params, x):
    def conv(v, w, b, stride, pad):
        y = jax.lax.conv_general_dilated(
            v, w, window_strides=(stride, stride),
            padding=[(pad, pad), (pad, pad)],
            dimension_numbers=("NCHW", "OIHW", "NCHW"))
        return y + b.reshape(1, -1, 1, 1)

    silu = lambda v: v * jax.nn.sigmoid(v)
    y = silu(conv(x, params["conv1_w"], params["conv1_b"], 2, 4))
    y = silu(conv(y, params["conv2_w"], params["conv2_b"], 2, 1))
    y = silu(conv(y, params["conv3_w"], params["conv3_b"], 2, 1))
    y = silu(conv(y, params["conv4_w"], params["conv4_b"], 2, 1))
    y = y.reshape(y.shape[0], -1)                       # NCHW flatten
    y = silu(y @ params["fc1_w"].T + params["fc1_b"])
    y = y @ params["fc2_w"].T + params["fc2_b"]
    return y[:, 0]


if __name__ == "__main__":
    key = jax.random.PRNGKey(0)
    k_param, k_input = jax.random.split(key)
    torch_params = init_params(k_param, hidden_features=32, out_dim=1)
    kparams = prepare_params(torch_params)

    # MNIST-like input, batch=2 (the size the Linear geometry implies).
    x = jax.random.normal(k_input, (2, 1, 28, 28), jnp.float32)

    out = jax.block_until_ready(jax.jit(cnn_forward)(kparams, x))
    assert out.shape == (2,), out.shape
    assert bool(jnp.all(jnp.isfinite(out)))

    ref = jax.block_until_ready(jax.jit(reference_forward)(torch_params, x))
    # Tolerance covers bf16 weight/activation quantization in the kernel path.
    assert jnp.allclose(out, ref, rtol=1e-1, atol=1e-1), (out, ref)

    print("KERNEL_OK")
</pallas_src>

<mosaic_0001>
module attributes {stable_mosaic.version = 11 : i64} {
  func.func @_cnn_fused_kernel(%arg0: i32, %arg1: memref<1x16x8x160xbf16, #tpu.memory_space<vmem>>, %arg2: memref<160x256xbf16, #tpu.memory_space<vmem>>, %arg3: memref<1x256xf32, #tpu.memory_space<vmem>>, %arg4: memref<768x256xbf16, #tpu.memory_space<vmem>>, %arg5: memref<1x256xf32, #tpu.memory_space<vmem>>, %arg6: memref<768x256xbf16, #tpu.memory_space<vmem>>, %arg7: memref<1x256xf32, #tpu.memory_space<vmem>>, %arg8: memref<768x128xbf16, #tpu.memory_space<vmem>>, %arg9: memref<1x128xf32, #tpu.memory_space<vmem>>, %arg10: memref<256x64xbf16, #tpu.memory_space<vmem>>, %arg11: memref<1x64xf32, #tpu.memory_space<vmem>>, %arg12: memref<1x64xf32, #tpu.memory_space<vmem>>, %arg13: memref<1x1xf32, #tpu.memory_space<vmem>>, %arg14: memref<1x8xf32, #tpu.memory_space<vmem>>, %arg15: memref<18x8x256xbf16, #tpu.memory_space<vmem>>, %arg16: memref<10x8x256xbf16, #tpu.memory_space<vmem>>, %arg17: memref<6x8x256xbf16, #tpu.memory_space<vmem>>) attributes {dimension_semantics = [#tpu.dimension_semantics<parallel>], iteration_bounds = array<i64: 1>, scalar_prefetch = 0 : i64, scratch_operands = 3 : i64, tpu.core_type = #tpu.core_type<tc>, window_params = [{transform_indices = @transform_0, window_bounds = array<i64: 1, 16, 8, 160>}, {pipeline_mode = #tpu.pipeline_mode<synchronous>, transform_indices = @transform_1, window_bounds = array<i64: 160, 256>}, {pipeline_mode = #tpu.pipeline_mode<synchronous>, transform_indices = @transform_2, window_bounds = array<i64: 1, 256>}, {pipeline_mode = #tpu.pipeline_mode<synchronous>, transform_indices = @transform_3, window_bounds = array<i64: 768, 256>}, {pipeline_mode = #tpu.pipeline_mode<synchronous>, transform_indices = @transform_4, window_bounds = array<i64: 1, 256>}, {pipeline_mode = #tpu.pipeline_mode<synchronous>, transform_indices = @transform_5, window_bounds = array<i64: 768, 256>}, {pipeline_mode = #tpu.pipeline_mode<synchronous>, transform_indices = @transform_6, window_bounds = array<i64: 1, 256>}, {pipeline_mode = #tpu.pipeline_mode<synchronous>, transform_indices = @transform_7, window_bounds = array<i64: 768, 128>}, {pipeline_mode = #tpu.pipeline_mode<synchronous>, transform_indices = @transform_8, window_bounds = array<i64: 1, 128>}, {pipeline_mode = #tpu.pipeline_mode<synchronous>, transform_indices = @transform_9, window_bounds = array<i64: 256, 64>}, {pipeline_mode = #tpu.pipeline_mode<synchronous>, transform_indices = @transform_10, window_bounds = array<i64: 1, 64>}, {pipeline_mode = #tpu.pipeline_mode<synchronous>, transform_indices = @transform_11, window_bounds = array<i64: 1, 64>}, {pipeline_mode = #tpu.pipeline_mode<synchronous>, transform_indices = @transform_12, window_bounds = array<i64: 1, 1>}, {transform_indices = @transform_13, window_bounds = array<i64: 1, 8>}]} {
    %c0 = arith.constant 0 : index
    %c0_0 = arith.constant 0 : index
    %c0_1 = arith.constant 0 : index
    %c0_2 = arith.constant 0 : index
    %0 = vector.load %arg1[%c0, %c0_0, %c0_1, %c0_2] : memref<1x16x8x160xbf16, #tpu.memory_space<vmem>>, vector<1x16x8x160xbf16>
    %1 = vector.shape_cast %0 : vector<1x16x8x160xbf16> to vector<16x8x160xbf16>
    %2 = vector.shape_cast %1 : vector<16x8x160xbf16> to vector<128x160xbf16>
    %c0_3 = arith.constant 0 : index
    %c0_4 = arith.constant 0 : index
    %3 = vector.load %arg2[%c0_3, %c0_4] : memref<160x256xbf16, #tpu.memory_space<vmem>>, vector<160x256xbf16>
    %cst = arith.constant dense<0.000000e+00> : vector<128x256xf32>
    %4 = tpu.matmul %2, %3, %cst {dimension_numbers = #tpu.dot_dimension_numbers<[1], [0], [0], [1], [0, 0, 1, 1], [], []>} : vector<128x160xbf16>, vector<160x256xbf16>, vector<128x256xf32> -> vector<128x256xf32>
    %c0_5 = arith.constant 0 : index
    %c0_6 = arith.constant 0 : index
    %5 = vector.load %arg3[%c0_5, %c0_6] : memref<1x256xf32, #tpu.memory_space<vmem>>, vector<1x256xf32>
    %6 = vector.broadcast %5 : vector<1x256xf32> to vector<128x256xf32>
    %7 = arith.addf %4, %6 : vector<128x256xf32>
    %cst_7 = arith.constant 0.000000e+00 : f32
    %8 = vector.broadcast %cst_7 : f32 to vector<128x256xf32>
    %9 = arith.subf %8, %7 : vector<128x256xf32>
    %10 = math.exp %9 : vector<128x256xf32>
    %cst_8 = arith.constant 1.000000e+00 : f32
    %11 = vector.broadcast %cst_8 : f32 to vector<128x256xf32>
    %12 = arith.addf %11, %10 : vector<128x256xf32>
    %13 = tpu.reciprocal %12 {approx = true} : vector<128x256xf32> -> vector<128x256xf32>
    %14 = arith.mulf %7, %13 : vector<128x256xf32>
    %cst_9 = arith.constant 0.000000e+00 : bf16
    %15 = vector.broadcast %cst_9 : bf16 to vector<8x256xbf16>
    %c0_10 = arith.constant 0 : index
    %c0_11 = arith.constant 0 : index
    %c0_12 = arith.constant 0 : index
    %16 = vector.load %arg15[%c0_10, %c0_11, %c0_12] : memref<18x8x256xbf16, #tpu.memory_space<vmem>>, vector<1x8x256xbf16>
    %17 = vector.shape_cast %16 : vector<1x8x256xbf16> to vector<8x256xbf16>
    %18 = vector.shape_cast %15 : vector<8x256xbf16> to vector<1x8x256xbf16>
    tpu.vector_store %arg15[%c0_10, %c0_11, %c0_12], %18 {strides = array<i32>} : memref<18x8x256xbf16, #tpu.memory_space<vmem>>, vector<1x8x256xbf16>,
    %cst_13 = arith.constant 0.000000e+00 : bf16
    %19 = vector.broadcast %cst_13 : bf16 to vector<8x256xbf16>
    %c17 = arith.constant 17 : index
    %c0_14 = arith.constant 0 : index
    %c0_15 = arith.constant 0 : index
    %20 = vector.load %arg15[%c17, %c0_14, %c0_15] : memref<18x8x256xbf16, #tpu.memory_space<vmem>>, vector<1x8x256xbf16>
    %21 = vector.shape_cast %20 : vector<1x8x256xbf16> to vector<8x256xbf16>
    %22 = vector.shape_cast %19 : vector<8x256xbf16> to vector<1x8x256xbf16>
    tpu.vector_store %arg15[%c17, %c0_14, %c0_15], %22 {strides = array<i32>} : memref<18x8x256xbf16, #tpu.memory_space<vmem>>, vector<1x8x256xbf16>,
    %23 = arith.truncf %14 : vector<128x256xf32> to vector<128x256xbf16>
    %24 = vector.shape_cast %23 : vector<128x256xbf16> to vector<16x8x256xbf16>
    %c1 = arith.constant 1 : index
    %c0_16 = arith.constant 0 : index
    %c0_17 = arith.constant 0 : index
    %25 = vector.load %arg15[%c1, %c0_16, %c0_17] : memref<18x8x256xbf16, #tpu.memory_space<vmem>>, vector<16x8x256xbf16>
    tpu.vector_store %arg15[%c1, %c0_16, %c0_17], %24 {strides = array<i32>} : memref<18x8x256xbf16, #tpu.memory_space<vmem>>, vector<16x8x256xbf16>,
    %c0_18 = arith.constant 0 : index
    %c0_19 = arith.constant 0 : index
    %c0_20 = arith.constant 0 : index
    %26 = vector.load %arg15[%c0_18, %c0_19, %c0_20] : memref<18x8x256xbf16, #tpu.memory_space<vmem>>, vector<18x8x256xbf16>
    %27 = vector.shape_cast %26 : vector<18x8x256xbf16> to vector<9x2x8x256xbf16>
    %28 = vector.extract_strided_slice %27 {offsets = [0, 0, 0, 0], sizes = [8, 1, 8, 256], strides = [1, 1, 1, 1]} : vector<9x2x8x256xbf16> to vector<8x1x8x256xbf16>
    %29 = vector.shape_cast %28 : vector<8x1x8x256xbf16> to vector<8x8x256xbf16>
    %30 = vector.extract_strided_slice %27 {offsets = [0, 1, 0, 0], sizes = [8, 1, 8, 256], strides = [1, 1, 1, 1]} : vector<9x2x8x256xbf16> to vector<8x1x8x256xbf16>
    %31 = vector.shape_cast %30 : vector<8x1x8x256xbf16> to vector<8x8x256xbf16>
    %32 = vector.extract_strided_slice %27 {offsets = [1, 0, 0, 0], sizes = [8, 1, 8, 256], strides = [1, 1, 1, 1]} : vector<9x2x8x256xbf16> to vector<8x1x8x256xbf16>
    %33 = vector.shape_cast %32 : vector<8x1x8x256xbf16> to vector<8x8x256xbf16>
    %34 = tpu.concatenate %29, %31, %33 in 2 : vector<8x8x256xbf16>, vector<8x8x256xbf16>, vector<8x8x256xbf16> -> vector<8x8x768xbf16>
    %35 = vector.shape_cast %34 : vector<8x8x768xbf16> to vector<64x768xbf16>
    %c0_21 = arith.constant 0 : index
    %c0_22 = arith.constant 0 : index
    %36 = vector.load %arg4[%c0_21, %c0_22] : memref<768x256xbf16, #tpu.memory_space<vmem>>, vector<768x256xbf16>
    %cst_23 = arith.constant dense<0.000000e+00> : vector<64x256xf32>
    %37 = tpu.matmul %35, %36, %cst_23 {dimension_numbers = #tpu.dot_dimension_numbers<[1], [0], [0], [1], [0, 0, 1, 1], [], []>} : vector<64x768xbf16>, vector<768x256xbf16>, vector<64x256xf32> -> vector<64x256xf32>
    %c0_24 = arith.constant 0 : index
    %c0_25 = arith.constant 0 : index
    %38 = vector.load %arg5[%c0_24, %c0_25] : memref<1x256xf32, #tpu.memory_space<vmem>>, vector<1x256xf32>
    %39 = vector.broadcast %38 : vector<1x256xf32> to vector<64x256xf32>
    %40 = arith.addf %37, %39 : vector<64x256xf32>
    %cst_26 = arith.constant 0.000000e+00 : f32
    %41 = vector.broadcast %cst_26 : f32 to vector<64x256xf32>
    %42 = arith.subf %41, %40 : vector<64x256xf32>
    %43 = math.exp %42 : vector<64x256xf32>
    %cst_27 = arith.constant 1.000000e+00 : f32
    %44 = vector.broadcast %cst_27 : f32 to vector<64x256xf32>
    %45 = arith.addf %44, %43 : vector<64x256xf32>
    %46 = tpu.reciprocal %45 {approx = true} : vector<64x256xf32> -> vector<64x256xf32>
    %47 = arith.mulf %40, %46 : vector<64x256xf32>
    %cst_28 = arith.constant 0.000000e+00 : bf16
    %48 = vector.broadcast %cst_28 : bf16 to vector<8x256xbf16>
    %c0_29 = arith.constant 0 : index
    %c0_30 = arith.constant 0 : index
    %c0_31 = arith.constant 0 : index
    %49 = vector.load %arg16[%c0_29, %c0_30, %c0_31] : memref<10x8x256xbf16, #tpu.memory_space<vmem>>, vector<1x8x256xbf16>
    %50 = vector.shape_cast %49 : vector<1x8x256xbf16> to vector<8x256xbf16>
    %51 = vector.shape_cast %48 : vector<8x256xbf16> to vector<1x8x256xbf16>
    tpu.vector_store %arg16[%c0_29, %c0_30, %c0_31], %51 {strides = array<i32>} : memref<10x8x256xbf16, #tpu.memory_space<vmem>>, vector<1x8x256xbf16>,
    %cst_32 = arith.constant 0.000000e+00 : bf16
    %52 = vector.broadcast %cst_32 : bf16 to vector<8x256xbf16>
    %c9 = arith.constant 9 : index
    %c0_33 = arith.constant 0 : index
    %c0_34 = arith.constant 0 : index
    %53 = vector.load %arg16[%c9, %c0_33, %c0_34] : memref<10x8x256xbf16, #tpu.memory_space<vmem>>, vector<1x8x256xbf16>
    %54 = vector.shape_cast %53 : vector<1x8x256xbf16> to vector<8x256xbf16>
    %55 = vector.shape_cast %52 : vector<8x256xbf16> to vector<1x8x256xbf16>
    tpu.vector_store %arg16[%c9, %c0_33, %c0_34], %55 {strides = array<i32>} : memref<10x8x256xbf16, #tpu.memory_space<vmem>>, vector<1x8x256xbf16>,
    %56 = arith.truncf %47 : vector<64x256xf32> to vector<64x256xbf16>
    %57 = vector.shape_cast %56 : vector<64x256xbf16> to vector<8x8x256xbf16>
    %c1_35 = arith.constant 1 : index
    %c0_36 = arith.constant 0 : index
    %c0_37 = arith.constant 0 : index
    %58 = vector.load %arg16[%c1_35, %c0_36, %c0_37] : memref<10x8x256xbf16, #tpu.memory_space<vmem>>, vector<8x8x256xbf16>
    tpu.vector_store %arg16[%c1_35, %c0_36, %c0_37], %57 {strides = array<i32>} : memref<10x8x256xbf16, #tpu.memory_space<vmem>>, vector<8x8x256xbf16>,
    %c0_38 = arith.constant 0 : index
    %c0_39 = arith.constant 0 : index
    %c0_40 = arith.constant 0 : index
    %59 = vector.load %arg16[%c0_38, %c0_39, %c0_40] : memref<10x8x256xbf16, #tpu.memory_space<vmem>>, vector<10x8x256xbf16>
    %60 = vector.shape_cast %59 : vector<10x8x256xbf16> to vector<5x2x8x256xbf16>
    %61 = vector.extract_strided_slice %60 {offsets = [0, 0, 0, 0], sizes = [4, 1, 8, 256], strides = [1, 1, 1, 1]} : vector<5x2x8x256xbf16> to vector<4x1x8x256xbf16>
    %62 = vector.shape_cast %61 : vector<4x1x8x256xbf16> to vector<4x8x256xbf16>
    %63 = vector.extract_strided_slice %60 {offsets = [0, 1, 0, 0], sizes = [4, 1, 8, 256], strides = [1, 1, 1, 1]} : vector<5x2x8x256xbf16> to vector<4x1x8x256xbf16>
    %64 = vector.shape_cast %63 : vector<4x1x8x256xbf16> to vector<4x8x256xbf16>
    %65 = vector.extract_strided_slice %60 {offsets = [1, 0, 0, 0], sizes = [4, 1, 8, 256], strides = [1, 1, 1, 1]} : vector<5x2x8x256xbf16> to vector<4x1x8x256xbf16>
    %66 = vector.shape_cast %65 : vector<4x1x8x256xbf16> to vector<4x8x256xbf16>
    %67 = tpu.concatenate %62, %64, %66 in 2 : vector<4x8x256xbf16>, vector<4x8x256xbf16>, vector<4x8x256xbf16> -> vector<4x8x768xbf16>
    %68 = vector.shape_cast %67 : vector<4x8x768xbf16> to vector<32x768xbf16>
    %c0_41 = arith.constant 0 : index
    %c0_42 = arith.constant 0 : index
    %69 = vector.load %arg6[%c0_41, %c0_42] : memref<768x256xbf16, #tpu.memory_space<vmem>>, vector<768x256xbf16>
    %cst_43 = arith.constant dense<0.000000e+00> : vector<32x256xf32>
    %70 = tpu.matmul %68, %69, %cst_43 {dimension_numbers = #tpu.dot_dimension_numbers<[1], [0], [0], [1], [0, 0, 1, 1], [], []>} : vector<32x768xbf16>, vector<768x256xbf16>, vector<32x256xf32> -> vector<32x256xf32>
    %c0_44 = arith.constant 0 : index
    %c0_45 = arith.constant 0 : index
    %71 = vector.load %arg7[%c0_44, %c0_45] : memref<1x256xf32, #tpu.memory_space<vmem>>, vector<1x256xf32>
    %72 = vector.broadcast %71 : vector<1x256xf32> to vector<32x256xf32>
    %73 = arith.addf %70, %72 : vector<32x256xf32>
    %cst_46 = arith.constant 0.000000e+00 : f32
    %74 = vector.broadcast %cst_46 : f32 to vector<32x256xf32>
    %75 = arith.subf %74, %73 : vector<32x256xf32>
    %76 = math.exp %75 : vector<32x256xf32>
    %cst_47 = arith.constant 1.000000e+00 : f32
    %77 = vector.broadcast %cst_47 : f32 to vector<32x256xf32>
    %78 = arith.addf %77, %76 : vector<32x256xf32>
    %79 = tpu.reciprocal %78 {approx = true} : vector<32x256xf32> -> vector<32x256xf32>
    %80 = arith.mulf %73, %79 : vector<32x256xf32>
    %cst_48 = arith.constant 0.000000e+00 : bf16
    %81 = vector.broadcast %cst_48 : bf16 to vector<8x256xbf16>
    %c0_49 = arith.constant 0 : index
    %c0_50 = arith.constant 0 : index
    %c0_51 = arith.constant 0 : index
    %82 = vector.load %arg17[%c0_49, %c0_50, %c0_51] : memref<6x8x256xbf16, #tpu.memory_space<vmem>>, vector<1x8x256xbf16>
    %83 = vector.shape_cast %82 : vector<1x8x256xbf16> to vector<8x256xbf16>
    %84 = vector.shape_cast %81 : vector<8x256xbf16> to vector<1x8x256xbf16>
    tpu.vector_store %arg17[%c0_49, %c0_50, %c0_51], %84 {strides = array<i32>} : memref<6x8x256xbf16, #tpu.memory_space<vmem>>, vector<1x8x256xbf16>,
    %cst_52 = arith.constant 0.000000e+00 : bf16
    %85 = vector.broadcast %cst_52 : bf16 to vector<8x256xbf16>
    %c5 = arith.constant 5 : index
    %c0_53 = arith.constant 0 : index
    %c0_54 = arith.constant 0 : index
    %86 = vector.load %arg17[%c5, %c0_53, %c0_54] : memref<6x8x256xbf16, #tpu.memory_space<vmem>>, vector<1x8x256xbf16>
    %87 = vector.shape_cast %86 : vector<1x8x256xbf16> to vector<8x256xbf16>
    %88 = vector.shape_cast %85 : vector<8x256xbf16> to vector<1x8x256xbf16>
    tpu.vector_store %arg17[%c5, %c0_53, %c0_54], %88 {strides = array<i32>} : memref<6x8x256xbf16, #tpu.memory_space<vmem>>, vector<1x8x256xbf16>,
    %89 = arith.truncf %80 : vector<32x256xf32> to vector<32x256xbf16>
    %90 = vector.shape_cast %89 : vector<32x256xbf16> to vector<4x8x256xbf16>
    %c1_55 = arith.constant 1 : index
    %c0_56 = arith.constant 0 : index
    %c0_57 = arith.constant 0 : index
    %91 = vector.load %arg17[%c1_55, %c0_56, %c0_57] : memref<6x8x256xbf16, #tpu.memory_space<vmem>>, vector<4x8x256xbf16>
    tpu.vector_store %arg17[%c1_55, %c0_56, %c0_57], %90 {strides = array<i32>} : memref<6x8x256xbf16, #tpu.memory_space<vmem>>, vector<4x8x256xbf16>,
    %c0_58 = arith.constant 0 : index
    %c0_59 = arith.constant 0 : index
    %c0_60 = arith.constant 0 : index
    %92 = vector.load %arg17[%c0_58, %c0_59, %c0_60] : memref<6x8x256xbf16, #tpu.memory_space<vmem>>, vector<6x8x256xbf16>
    %93 = vector.shape_cast %92 : vector<6x8x256xbf16> to vector<3x2x8x256xbf16>
    %94 = vector.extract_strided_slice %93 {offsets = [0, 0, 0, 0], sizes = [2, 1, 8, 256], strides = [1, 1, 1, 1]} : vector<3x2x8x256xbf16> to vector<2x1x8x256xbf16>
    %95 = vector.shape_cast %94 : vector<2x1x8x256xbf16> to vector<2x8x256xbf16>
    %96 = vector.extract_strided_slice %93 {offsets = [0, 1, 0, 0], sizes = [2, 1, 8, 256], strides = [1, 1, 1, 1]} : vector<3x2x8x256xbf16> to vector<2x1x8x256xbf16>
    %97 = vector.shape_cast %96 : vector<2x1x8x256xbf16> to vector<2x8x256xbf16>
    %98 = vector.extract_strided_slice %93 {offsets = [1, 0, 0, 0], sizes = [2, 1, 8, 256], strides = [1, 1, 1, 1]} : vector<3x2x8x256xbf16> to vector<2x1x8x256xbf16>
    %99 = vector.shape_cast %98 : vector<2x1x8x256xbf16> to vector<2x8x256xbf16>
    %100 = tpu.concatenate %95, %97, %99 in 2 : vector<2x8x256xbf16>, vector<2x8x256xbf16>, vector<2x8x256xbf16> -> vector<2x8x768xbf16>
    %101 = vector.shape_cast %100 : vector<2x8x768xbf16> to vector<16x768xbf16>
    %c0_61 = arith.constant 0 : index
    %c0_62 = arith.constant 0 : index
    %102 = vector.load %arg8[%c0_61, %c0_62] : memref<768x128xbf16, #tpu.memory_space<vmem>>, vector<768x128xbf16>
    %cst_63 = arith.constant dense<0.000000e+00> : vector<16x128xf32>
    %103 = tpu.matmul %101, %102, %cst_63 {dimension_numbers = #tpu.dot_dimension_numbers<[1], [0], [0], [1], [0, 0, 1, 1], [], []>} : vector<16x768xbf16>, vector<768x128xbf16>, vector<16x128xf32> -> vector<16x128xf32>
    %c0_64 = arith.constant 0 : index
    %c0_65 = arith.constant 0 : index
    %104 = vector.load %arg9[%c0_64, %c0_65] : memref<1x128xf32, #tpu.memory_space<vmem>>, vector<1x128xf32>
    %105 = vector.broadcast %104 : vector<1x128xf32> to vector<16x128xf32>
    %106 = arith.addf %103, %105 : vector<16x128xf32>
    %cst_66 = arith.constant 0.000000e+00 : f32
    %107 = vector.broadcast %cst_66 : f32 to vector<16x128xf32>
    %108 = arith.subf %107, %106 : vector<16x128xf32>
    %109 = math.exp %108 : vector<16x128xf32>
    %cst_67 = arith.constant 1.000000e+00 : f32
    %110 = vector.broadcast %cst_67 : f32 to vector<16x128xf32>
    %111 = arith.addf %110, %109 : vector<16x128xf32>
    %112 = tpu.reciprocal %111 {approx = true} : vector<16x128xf32> -> vector<16x128xf32>
    %113 = arith.mulf %106, %112 : vector<16x128xf32>
    %114 = arith.truncf %113 : vector<16x128xf32> to vector<16x128xbf16>
    %115 = vector.shape_cast %114 : vector<16x128xbf16> to vector<2x8x128xbf16>
    %116 = vector.extract_strided_slice %115 {offsets = [0, 0, 0], sizes = [1, 8, 128], strides = [1, 1, 1]} : vector<2x8x128xbf16> to vector<1x8x128xbf16>
    %117 = vector.shape_cast %116 : vector<1x8x128xbf16> to vector<8x128xbf16>
    %118 = vector.extract_strided_slice %115 {offsets = [1, 0, 0], sizes = [1, 8, 128], strides = [1, 1, 1]} : vector<2x8x128xbf16> to vector<1x8x128xbf16>
    %119 = vector.shape_cast %118 : vector<1x8x128xbf16> to vector<8x128xbf16>
    %120 = tpu.concatenate %117, %119 in 1 : vector<8x128xbf16>, vector<8x128xbf16> -> vector<8x256xbf16>
    %c0_68 = arith.constant 0 : index
    %c0_69 = arith.constant 0 : index
    %121 = vector.load %arg10[%c0_68, %c0_69] : memref<256x64xbf16, #tpu.memory_space<vmem>>, vector<256x64xbf16>
    %cst_70 = arith.constant dense<0.000000e+00> : vector<8x64xf32>
    %122 = tpu.matmul %120, %121, %cst_70 {dimension_numbers = #tpu.dot_dimension_numbers<[1], [0], [0], [1], [0, 0, 1, 1], [], []>} : vector<8x256xbf16>, vector<256x64xbf16>, vector<8x64xf32> -> vector<8x64xf32>
    %c0_71 = arith.constant 0 : index
    %c0_72 = arith.constant 0 : index
    %123 = vector.load %arg11[%c0_71, %c0_72] : memref<1x64xf32, #tpu.memory_space<vmem>>, vector<1x64xf32>
    %124 = vector.broadcast %123 : vector<1x64xf32> to vector<8x64xf32>
    %125 = arith.addf %122, %124 : vector<8x64xf32>
    %cst_73 = arith.constant 0.000000e+00 : f32
    %126 = vector.broadcast %cst_73 : f32 to vector<8x64xf32>
    %127 = arith.subf %126, %125 : vector<8x64xf32>
    %128 = math.exp %127 : vector<8x64xf32>
    %cst_74 = arith.constant 1.000000e+00 : f32
    %129 = vector.broadcast %cst_74 : f32 to vector<8x64xf32>
    %130 = arith.addf %129, %128 : vector<8x64xf32>
    %131 = tpu.reciprocal %130 {approx = true} : vector<8x64xf32> -> vector<8x64xf32>
    %132 = arith.mulf %125, %131 : vector<8x64xf32>
    %c0_75 = arith.constant 0 : index
    %c0_76 = arith.constant 0 : index
    %133 = vector.load %arg12[%c0_75, %c0_76] : memref<1x64xf32, #tpu.memory_space<vmem>>, vector<1x64xf32>
    %134 = vector.broadcast %133 : vector<1x64xf32> to vector<8x64xf32>
    %135 = arith.mulf %132, %134 : vector<8x64xf32>
    %cst_77 = arith.constant dense<0.000000e+00> : vector<8xf32>
    %136 = vector.multi_reduction <add>, %135, %cst_77 [1] : vector<8x64xf32> to vector<8xf32>
    %c0_78 = arith.constant 0 : index
    %c0_79 = arith.constant 0 : index
    %137 = vector.load %arg13[%c0_78, %c0_79] : memref<1x1xf32, #tpu.memory_space<vmem>>, vector<1x1xf32>
    %138 = vector.shape_cast %136 : vector<8xf32> to vector<1x8xf32>
    %139 = vector.broadcast %137 : vector<1x1xf32> to vector<1x8xf32>
    %140 = arith.addf %138, %139 : vector<1x8xf32>
    %c0_80 = arith.constant 0 : index
    %c0_81 = arith.constant 0 : index
    %141 = vector.load %arg14[%c0_80, %c0_81] : memref<1x8xf32, #tpu.memory_space<vmem>>, vector<1x8xf32>
    tpu.vector_store %arg14[%c0_80, %c0_81], %140 {strides = array<i32>} : memref<1x8xf32, #tpu.memory_space<vmem>>, vector<1x8xf32>,
    return
  }
  func.func @transform_0(%arg0: i32) -> (i32, i32, i32, i32) {
    %c0_i32 = arith.constant 0 : i32
    %c0_i32_0 = arith.constant 0 : i32
    %c0_i32_1 = arith.constant 0 : i32
    %c0_i32_2 = arith.constant 0 : i32
    return %arg0, %c0_i32, %c0_i32_0, %c0_i32_1 : i32, i32, i32, i32
  }
  func.func @transform_1(%arg0: i32) -> (i32, i32) {
    %c0_i32 = arith.constant 0 : i32
    %c0_i32_0 = arith.constant 0 : i32
    %c0_i32_1 = arith.constant 0 : i32
    return %c0_i32, %c0_i32_0 : i32, i32
  }
  func.func @transform_2(%arg0: i32) -> (i32, i32) {
    %c0_i32 = arith.constant 0 : i32
    %c0_i32_0 = arith.constant 0 : i32
    %c0_i32_1 = arith.constant 0 : i32
    return %c0_i32, %c0_i32_0 : i32, i32
  }
  func.func @transform_3(%arg0: i32) -> (i32, i32) {
    %c0_i32 = arith.constant 0 : i32
    %c0_i32_0 = arith.constant 0 : i32
    %c0_i32_1 = arith.constant 0 : i32
    return %c0_i32, %c0_i32_0 : i32, i32
  }
  func.func @transform_4(%arg0: i32) -> (i32, i32) {
    %c0_i32 = arith.constant 0 : i32
    %c0_i32_0 = arith.constant 0 : i32
    %c0_i32_1 = arith.constant 0 : i32
    return %c0_i32, %c0_i32_0 : i32, i32
  }
  func.func @transform_5(%arg0: i32) -> (i32, i32) {
    %c0_i32 = arith.constant 0 : i32
    %c0_i32_0 = arith.constant 0 : i32
    %c0_i32_1 = arith.constant 0 : i32
    return %c0_i32, %c0_i32_0 : i32, i32
  }
  func.func @transform_6(%arg0: i32) -> (i32, i32) {
    %c0_i32 = arith.constant 0 : i32
    %c0_i32_0 = arith.constant 0 : i32
    %c0_i32_1 = arith.constant 0 : i32
    return %c0_i32, %c0_i32_0 : i32, i32
  }
  func.func @transform_7(%arg0: i32) -> (i32, i32) {
    %c0_i32 = arith.constant 0 : i32
    %c0_i32_0 = arith.constant 0 : i32
    %c0_i32_1 = arith.constant 0 : i32
    return %c0_i32, %c0_i32_0 : i32, i32
  }
  func.func @transform_8(%arg0: i32) -> (i32, i32) {
    %c0_i32 = arith.constant 0 : i32
    %c0_i32_0 = arith.constant 0 : i32
    %c0_i32_1 = arith.constant 0 : i32
    return %c0_i32, %c0_i32_0 : i32, i32
  }
  func.func @transform_9(%arg0: i32) -> (i32, i32) {
    %c0_i32 = arith.constant 0 : i32
    %c0_i32_0 = arith.constant 0 : i32
    %c0_i32_1 = arith.constant 0 : i32
    return %c0_i32, %c0_i32_0 : i32, i32
  }
  func.func @transform_10(%arg0: i32) -> (i32, i32) {
    %c0_i32 = arith.constant 0 : i32
    %c0_i32_0 = arith.constant 0 : i32
    %c0_i32_1 = arith.constant 0 : i32
    return %c0_i32, %c0_i32_0 : i32, i32
  }
  func.func @transform_11(%arg0: i32) -> (i32, i32) {
    %c0_i32 = arith.constant 0 : i32
    %c0_i32_0 = arith.constant 0 : i32
    %c0_i32_1 = arith.constant 0 : i32
    return %c0_i32, %c0_i32_0 : i32, i32
  }
  func.func @transform_12(%arg0: i32) -> (i32, i32) {
    %c0_i32 = arith.constant 0 : i32
    %c0_i32_0 = arith.constant 0 : i32
    %c0_i32_1 = arith.constant 0 : i32
    return %c0_i32, %c0_i32_0 : i32, i32
  }
  func.func @transform_13(%arg0: i32) -> (i32, i32) {
    %c0_i32 = arith.constant 0 : i32
    %c0_i32_0 = arith.constant 0 : i32
    return %arg0, %c0_i32 : i32, i32
  }
}

</mosaic_0001>

<bundles_post_ra>
// kernel: cnn_forward.1
= control target key start
LH: loop header
LB: loop body
LE: loop exit
PB: predicated region body
PF: predicated region fallthrough
CT: control target
= control target key end

     0   :  { %vm267_vm0 = vcmask 261120   ;;  %vm3434_vm1 = vcmask 523264   ;;  %vm3457_vm2 = vcmask 57344   ;;  %s6168_s1 = inlined_call_operand.vmem [shape: bf16[160,256], index: 1, kind: input, shape index: {}]   ;;  %s6169_s0 = inlined_call_operand.vmem [shape: bf16[1,16,8,160], index: 0, kind: input, shape index: {}]   ;;  %s6170_s3 = inlined_call_operand.vmem [shape: bf16[768,256], index: 3, kind: input, shape index: {}]   ;;  %s6171_s2 = inlined_call_operand.vmem [shape: f32[1,256], index: 2, kind: input, shape index: {}]   ;;  %s6172_s5 = inlined_call_operand.vmem [shape: bf16[768,256], index: 5, kind: input, shape index: {}]   ;;  %s6173_s4 = inlined_call_operand.vmem [shape: f32[1,256], index: 4, kind: input, shape index: {}]   ;;  %s6174_s7 = inlined_call_operand.vmem [shape: bf16[768,128], index: 7, kind: input, shape index: {}]   ;;  %s6175_s6 = inlined_call_operand.vmem [shape: f32[1,256], index: 6, kind: input, shape index: {}]   ;;  %s6176_s9 = inlined_call_operand.vmem [shape: bf16[256,64], index: 9, kind: input, shape index: {}]   ;;  %s6177_s8 = inlined_call_operand.vmem [shape: f32[1,128], index: 8, kind: input, shape index: {}]   ;;  %s6178_s12 = inlined_call_operand.<no memory space> [shape: f32[1,1], index: 12, kind: input, shape index: {}]   ;;  %s6179_s10 = inlined_call_operand.vmem [shape: f32[1,64], index: 10, kind: input, shape index: {}]   ;;  %s6180_s11 = inlined_call_operand.vmem [shape: f32[1,64], index: 11, kind: input, shape index: {}]   ;;  %s6181_s13 = inlined_call_operand.vmem [shape: f32[1,8], index: 13, kind: output, shape index: {}]  }
   0x1   :  { %v4066_v0 = vld [vmem:[%s6168_s1 + $0x4] ss:$8 sps:$4 sm:$0xff]   ;;  %v4068_v1 = vld [vmem:[%s6168_s1] ss:$8 sps:$4 sm:$0xff]   ;;  %v4069_v2 = vld [vmem:[%s6168_s1 + $0x14] ss:$8 sps:$4 sm:$0xff]  }
   0x2   :  { %292 = vmatprep.subr.bf16.mxu0 %v4066_v0  ;;  %v4071_v3 = vld [vmem:[%s6168_s1 + $0x10] ss:$8 sps:$4 sm:$0xff]   ;;  %v4072_v4 = vld [vmem:[%s6168_s1 + $0x24] ss:$8 sps:$4 sm:$0xff]   ;;  %v4074_v5 = vld [vmem:[%s6168_s1 + $0x20] ss:$8 sps:$4 sm:$0xff]  }
   0x3   :  { %293 = vmatpush1.bf16.msra.mxu0 %v4068_v1  ;;  %v4075_v6 = vld [vmem:[%s6168_s1 + $0x34] ss:$8 sps:$4 sm:$0xff]   ;;  %v4077_v7 = vld [vmem:[%s6168_s1 + $0x30] ss:$8 sps:$4 sm:$0xff]   ;;  %v4078_v8 = vld [vmem:[%s6168_s1 + $0x44] ss:$8 sps:$4 sm:$0xff]  }
   0x4   :  { %294 = vmatprep.subr.bf16.mxu0 %v4069_v2  ;;  %v4098_v9 = vld [vmem:[%s6169_s0 + $0x4] ss:$8 sps:$4 sm:$0xff]   ;;  %v4080_v10 = vld [vmem:[%s6168_s1 + $0x40] ss:$8 sps:$4 sm:$0xff]   ;;  %v4081_v11 = vld [vmem:[%s6168_s1 + $0x54] ss:$8 sps:$4 sm:$0xff]  }
   0x5   :  { %3499 = vmatprep.mubr.msk.bf16.mxu0 %vm267_vm0, %v4098_v9  ;;  %v4083_v12 = vld [vmem:[%s6168_s1 + $0x50] ss:$8 sps:$4 sm:$0xff]   ;;  %v4084_v13 = vld [vmem:[%s6168_s1 + $0x64] ss:$8 sps:$4 sm:$0xff]   ;;  %v4086_v14 = vld [vmem:[%s6168_s1 + $0x60] ss:$8 sps:$4 sm:$0xff]  }
   0x6   :  { %v4087_v15 = vld [vmem:[%s6168_s1 + $0x74] ss:$8 sps:$4 sm:$0xff]   ;;  %v4120_v16 = vld [vmem:[%s6170_s3 + $0x4] ss:$8 sps:$4 sm:$0xff]   ;;  %v4122_v17 = vld [vmem:[%s6170_s3] ss:$8 sps:$4 sm:$0xff]  }
   0x7   :  { %295 = vmatpush1.bf16.msra.mxu0 %v4071_v3  ;;  %v4089_v18 = vld [vmem:[%s6168_s1 + $0x70] ss:$8 sps:$4 sm:$0xff]   ;;  %1417 = vmatprep.subr.bf16.mxu1 %v4120_v16  ;;  %v4123_v19 = vld [vmem:[%s6170_s3 + $0x14] ss:$8 sps:$4 sm:$0xff]   ;;  %v4090_v20 = vld [vmem:[%s6168_s1 + $0x84] ss:$8 sps:$4 sm:$0xff]  }
   0x8   :  { %296 = vmatprep.subr.bf16.mxu0 %v4072_v4  ;;  %1418 = vmatpush1.bf16.msra.mxu1 %v4122_v17  ;;  %v4125_v21 = vld [vmem:[%s6170_s3 + $0x10] ss:$8 sps:$4 sm:$0xff]   ;;  %v4126_v22 = vld [vmem:[%s6170_s3 + $0x24] ss:$8 sps:$4 sm:$0xff]   ;;  %v4092_v23 = vld [vmem:[%s6168_s1 + $0x80] ss:$8 sps:$4 sm:$0xff]  }
   0x9   :  { %1419 = vmatprep.subr.bf16.mxu1 %v4123_v19  ;;  %v4093_v24 = vld [vmem:[%s6168_s1 + $0x94] ss:$8 sps:$4 sm:$0xff]   ;;  %v4128_v25 = vld [vmem:[%s6170_s3 + $0x20] ss:$8 sps:$4 sm:$0xff]   ;;  %v4095_v27 = vld [vmem:[%s6168_s1 + $0x90] ss:$8 sps:$4 sm:$0xff]  }
   0xa   :  { %v4129_v26 = vld [vmem:[%s6170_s3 + $0x34] ss:$8 sps:$4 sm:$0xff]   ;;  %v4131_v28 = vld [vmem:[%s6170_s3 + $0x30] ss:$8 sps:$4 sm:$0xff]   ;;  %v4132_v29 = vld [vmem:[%s6170_s3 + $0x44] ss:$8 sps:$4 sm:$0xff]  }
   0xb   :  { %297 = vmatpush1.bf16.msra.mxu0 %v4074_v5  ;;  %v4096_v30 = vld [vmem:[%s6169_s0] ss:$8 sps:$4 sm:$0xff]   ;;  %v4099_v31 = vld [vmem:[%s6169_s0 + $0x14] ss:$8 sps:$4 sm:$0xff]   ;;  %v4137_v34 = vld [vmem:[%s6170_s3 + $0x50] ss:$8 sps:$4 sm:$0xff]  }
   0xc   :  { %298 = vmatprep.subr.bf16.mxu0 %v4075_v6  ;;  %1420 = vmatpush1.bf16.msra.mxu1 %v4125_v21  ;;  %v4134_v32 = vld [vmem:[%s6170_s3 + $0x40] ss:$8 sps:$4 sm:$0xff]   ;;  %v4135_v33 = vld [vmem:[%s6170_s3 + $0x54] ss:$8 sps:$4 sm:$0xff]   ;;  %v4101_v35 = vld [vmem:[%s6169_s0 + $0x10] ss:$8 sps:$4 sm:$0xff]   ;;  %v6182_v6 = vlaneseq }
   0xd   :  { %1421 = vmatprep.subr.bf16.mxu1 %v4126_v22  ;;  %v4102_v36 = vld [vmem:[%s6169_s0 + $0x24] ss:$8 sps:$4 sm:$0xff]   ;;  %v4104_v37 = vld [vmem:[%s6169_s0 + $0x20] ss:$8 sps:$4 sm:$0xff]   ;;  %v4105_v38 = vld [vmem:[%s6169_s0 + $0x34] ss:$8 sps:$4 sm:$0xff]  }
   0xe   :  { %v4107_v39 = vld [vmem:[%s6169_s0 + $0x30] ss:$8 sps:$4 sm:$0xff]   ;;  %v4108_v40 = vld [vmem:[%s6169_s0 + $0x44] ss:$8 sps:$4 sm:$0xff]   ;;  %v4110_v41 = vld [vmem:[%s6169_s0 + $0x40] ss:$8 sps:$4 sm:$0xff]  }
   0xf   :  { %299 = vmatpush1.bf16.msra.mxu0 %v4077_v7  ;;  %v4111_v42 = vld [vmem:[%s6169_s0 + $0x54] ss:$8 sps:$4 sm:$0xff]   ;;  %v4113_v43 = vld [vmem:[%s6169_s0 + $0x50] ss:$8 sps:$4 sm:$0xff]   ;;  %v4114_v44 = vld [vmem:[%s6169_s0 + $0x64] ss:$8 sps:$4 sm:$0xff]  }
  0x10   :  { %300 = vmatprep.subr.bf16.mxu0 %v4078_v8  ;;  %1422 = vmatpush1.bf16.msra.mxu1 %v4128_v25  ;;  %v4116_v45 = vld [vmem:[%s6169_s0 + $0x60] ss:$8 sps:$4 sm:$0xff]   ;;  %v4117_v46 = vld [vmem:[%s6169_s0 + $0x74] ss:$8 sps:$4 sm:$0xff]   ;;  %v4119_v47 = vld [vmem:[%s6169_s0 + $0x70] ss:$8 sps:$4 sm:$0xff]  }
  0x11   :  { %1423 = vmatprep.subr.bf16.mxu1 %v4129_v26  ;;  %v4138_v48 = vld [vmem:[%s6170_s3 + $0x64] ss:$8 sps:$4 sm:$0xff]   ;;  %v4140_v49 = vld [vmem:[%s6170_s3 + $0x60] ss:$8 sps:$4 sm:$0xff]   ;;  %v4141_v50 = vld [vmem:[%s6170_s3 + $0x74] ss:$8 sps:$4 sm:$0xff]  }
  0x12   :  { %v4143_v51 = vld [vmem:[%s6170_s3 + $0x70] ss:$8 sps:$4 sm:$0xff]   ;;  %v4144_v52 = vld [vmem:[%s6170_s3 + $0x84] ss:$8 sps:$4 sm:$0xff]   ;;  %v4146_v53 = vld [vmem:[%s6170_s3 + $0x80] ss:$8 sps:$4 sm:$0xff]  }
  0x13   :  { %301 = vmatpush1.bf16.msra.mxu0 %v4080_v10  ;;  %v4147_v54 = vld [vmem:[%s6170_s3 + $0x94] ss:$8 sps:$4 sm:$0xff]   ;;  %v4149_v55 = vld [vmem:[%s6170_s3 + $0x90] ss:$8 sps:$4 sm:$0xff]   ;;  %v4150_v56 = vld [vmem:[%s6170_s3 + $0xa4] ss:$8 sps:$4 sm:$0xff]  }
  0x14   :  { %302 = vmatprep.subr.bf16.mxu0 %v4081_v11  ;;  %1424 = vmatpush1.bf16.msra.mxu1 %v4131_v28  ;;  %v4152_v57 = vld [vmem:[%s6170_s3 + $0xa0] ss:$8 sps:$4 sm:$0xff]   ;;  %v4153_v58 = vld [vmem:[%s6170_s3 + $0xb4] ss:$8 sps:$4 sm:$0xff]   ;;  %v4155_v59 = vld [vmem:[%s6170_s3 + $0xb0] ss:$8 sps:$4 sm:$0xff]  }
  0x15   :  { %1425 = vmatprep.subr.bf16.mxu1 %v4132_v29  ;;  %v4156_v60 = vld [vmem:[%s6170_s3 + $0xc4] ss:$8 sps:$4 sm:$0xff]   ;;  %v4158_v61 = vld [vmem:[%s6170_s3 + $0xc0] ss:$8 sps:$4 sm:$0xff]   ;;  %v4159_v62 = vld [vmem:[%s6170_s3 + $0xd4] ss:$8 sps:$4 sm:$0xff]  }
  0x16   :  { %v4161_v63 = vld [vmem:[%s6170_s3 + $0xd0] ss:$8 sps:$4 sm:$0xff]   ;;  %v4162_v0 = vld [vmem:[%s6170_s3 + $0xe4] ss:$8 sps:$4 sm:$0xff]   ;;  %v4164_v1 = vld [vmem:[%s6170_s3 + $0xe0] ss:$8 sps:$4 sm:$0xff]  }
  0x17   :  { %303 = vmatpush1.bf16.msra.mxu0 %v4083_v12  ;;  %v4165_v2 = vld [vmem:[%s6170_s3 + $0xf4] ss:$8 sps:$4 sm:$0xff]   ;;  %v4167_v3 = vld [vmem:[%s6170_s3 + $0xf0] ss:$8 sps:$4 sm:$0xff]   ;;  %v4170_v4 = vld [vmem:[%s6170_s3 + $0x104] ss:$8 sps:$4 sm:$0xff]  }
  0x18   :  { %304 = vmatprep.subr.bf16.mxu0 %v4084_v13  ;;  %1426 = vmatpush1.bf16.msra.mxu1 %v4134_v32  ;;  %v6183_v5 = vmov 0   ;;  %v4996_v7 = vshrl.u32 %v6182_v6, 7  ;;  %v83_v9 = vld [vmem:[%s6171_s2] sm:$0x3]  ;;  %v4272_v6 = vld [vmem:[%s6172_s5 + $0x24] ss:$8 sps:$4 sm:$0xff]  }
  0x19   :  { %1427 = vmatprep.subr.bf16.mxu1 %v4135_v33  ;;  %4065 = vset.pattern.permute.xlu0 %v6183_v5 }
  0x1a   :  { %v4999_v8 = vsub.s32 0, %v4996_v7  ;;  %v5005_v10 = vsub.s32 1, %v4996_v7 }
  0x1b   :  { %305 = vmatpush1.bf16.msra.mxu0 %v4086_v14 }
  0x1c   :  { %306 = vmatprep.subr.bf16.mxu0 %v4087_v15  ;;  %1428 = vmatpush1.bf16.msra.mxu1 %v4137_v34  ;;  %v5008_v11 = vrot.slane %v83_v9, %v4999_v8  ;;  %v5011_v12 = vrot.slane %v83_v9, %v5005_v10 }
  0x1d   :  { %1429 = vmatprep.subr.bf16.mxu1 %v4138_v48 }
  0x1f   :  { %307 = vmatpush1.bf16.msra.mxu0 %v4089_v18 }
  0x20   :  { %308 = vmatprep.subr.bf16.mxu0 %v4090_v20  ;;  %1430 = vmatpush1.bf16.msra.mxu1 %v4140_v49 }
  0x21   :  { %1431 = vmatprep.subr.bf16.mxu1 %v4141_v50 }
  0x23   :  { %309 = vmatpush1.bf16.msra.mxu0 %v4092_v23 }
  0x24   :  { %310 = vmatprep.subr.bf16.mxu0 %v4093_v24  ;;  %1432 = vmatpush1.bf16.msra.mxu1 %v4143_v51 }
  0x25   :  { %1433 = vmatprep.subr.bf16.mxu1 %v4144_v52 }
  0x27   :  { %311 = vmatpush1.bf16.msra.mxu0 %v4095_v27 }
  0x28   :  { %1434 = vmatpush1.bf16.msra.mxu1 %v4146_v53 }
  0x29   :  { %1435 = vmatprep.subr.bf16.mxu1 %v4147_v54 }
  0x2a   :  { %325 = vmatmul.mubr.bf16.vlgmr.msra.gmra.mrb[0].mxu0 %v4096_v30 }
  0x2b   :  { %3500 = vmatprep.mubr.msk.bf16.mxu0 %vm267_vm0, %v4099_v31 }
  0x2c   :  { %1436 = vmatpush1.bf16.msra.mxu1 %v4149_v55 }
  0x2d   :  { %1437 = vmatprep.subr.bf16.mxu1 %v4150_v56 }
  0x30   :  { %1438 = vmatpush1.bf16.msra.mxu1 %v4152_v57 }
  0x31   :  { %1439 = vmatprep.subr.bf16.mxu1 %v4153_v58 }
  0x32   :  { %335 = vmatmul.mubr.bf16.gmra.mrb[4].mxu0 %v4101_v35 }
  0x33   :  { %3501 = vmatprep.mubr.msk.bf16.mxu0 %vm267_vm0, %v4102_v36 }
  0x34   :  { %1440 = vmatpush1.bf16.msra.mxu1 %v4155_v59 }
  0x35   :  { %1441 = vmatprep.subr.bf16.mxu1 %v4156_v60 }
  0x38   :  { %1442 = vmatpush1.bf16.msra.mxu1 %v4158_v61 }
  0x39   :  { %1443 = vmatprep.subr.bf16.mxu1 %v4159_v62 }
  0x3a   :  { %345 = vmatmul.mubr.bf16.gmra.mrb[8].mxu0 %v4104_v37 }
  0x3b   :  { %3502 = vmatprep.mubr.msk.bf16.mxu0 %vm267_vm0, %v4105_v38 }
  0x3c   :  { %1444 = vmatpush1.bf16.msra.mxu1 %v4161_v63 }
  0x3d   :  { %1445 = vmatprep.subr.bf16.mxu1 %v4162_v0 }
  0x40   :  { %1446 = vmatpush1.bf16.msra.mxu1 %v4164_v1 }
  0x41   :  { %1447 = vmatprep.subr.bf16.mxu1 %v4165_v2 }
  0x42   :  { %355 = vmatmul.mubr.bf16.gmra.mrb[12].mxu0 %v4107_v39 }
  0x43   :  { %3503 = vmatprep.mubr.msk.bf16.mxu0 %vm267_vm0, %v4108_v40 }
  0x44   :  { %1448 = vmatpush1.bf16.msra.mxu1 %v4167_v3 }
  0x45   :  { %1490 = vmatprep.subr.bf16.mxu1 %v4170_v4 }
  0x4a   :  { %365 = vmatmul.mubr.bf16.gmra.mrb[16].mxu0 %v4110_v41 }
  0x4b   :  { %3504 = vmatprep.mubr.msk.bf16.mxu0 %vm267_vm0, %v4111_v42 }
  0x52   :  { %375 = vmatmul.mubr.bf16.gmra.mrb[20].mxu0 %v4113_v43 }
  0x53   :  { %3505 = vmatprep.mubr.msk.bf16.mxu0 %vm267_vm0, %v4114_v44 }
  0x5a   :  { %385 = vmatmul.mubr.bf16.gmra.mrb[24].mxu0 %v4116_v45 }
  0x5b   :  { %3506 = vmatprep.mubr.msk.bf16.mxu0 %vm267_vm0, %v4117_v46 }
  0x62   :  { %395 = vmatmul.mubr.bf16.gmra.mrb[28].mxu0 %v4119_v47 }
  0xfd   :  { %v326_v13 = vpop.f32.mrb[0].mxu0 }
  0xfe   :  { %v5014_v14 = vadd.f32 %v326_v13, %v5008_v11  ;;  %v328_v15 = vpop.f32.mrb[1].mxu0 }
  0xff   :  { %v5017_v16 = vadd.f32 %v328_v15, %v5011_v12  ;;  %v330_v17 = vpop.f32.mrb[2].mxu0 }
 0x100   :  { %v405_v18 = vsub.f32 0.0, %v5014_v14  ;;  %v5021_v19 = vadd.f32 %v330_v17, %v5008_v11  ;;  %v332_v20 = vpop.f32.mrb[3].mxu0 }
 0x101   :  { %v406_v21 = vsub.f32 0.0, %v5017_v16  ;;  %v5025_v22 = vadd.f32 %v332_v20, %v5011_v12 }
 0x102   :  { %v437_v23 = vmul.f32 1.442695, %v405_v18  ;;  %v407_v24 = vsub.f32 0.0, %v5021_v19 }
 0x103   :  { %v439_v25 = vmul.f32 1.442695, %v406_v21  ;;  %v408_v26 = vsub.f32 0.0, %v5025_v22 }
 0x104   :  { %4472 = vpow2.f32 %v437_v23  ;;  %v441_v27 = vmul.f32 1.442695, %v407_v24 }
 0x105   :  { %4474 = vpow2.f32 %v439_v25  ;;  %v443_v28 = vmul.f32 1.442695, %v408_v26  ;;  %v336_v29 = vpop.f32.mrb[4].mxu0 }
 0x106   :  { %4476 = vpow2.f32 %v441_v27  ;;  %v5030_v30 = vadd.f32 %v336_v29, %v5008_v11  ;;  %v338_v31 = vpop.f32.mrb[5].mxu0 }
 0x107   :  { %4478 = vpow2.f32 %v443_v28  ;;  %v5033_v32 = vadd.f32 %v338_v31, %v5011_v12  ;;  %v340_v33 = vpop.f32.mrb[6].mxu0 }
 0x108   :  { %v409_v34 = vsub.f32 0.0, %v5030_v30  ;;  %v5037_v35 = vadd.f32 %v340_v33, %v5008_v11  ;;  %v342_v36 = vpop.f32.mrb[7].mxu0 }
 0x109   :  { %v410_v37 = vsub.f32 0.0, %v5033_v32  ;;  %v5041_v38 = vadd.f32 %v342_v36, %v5011_v12 }
 0x10a   :  { %v445_v39 = vmul.f32 1.442695, %v409_v34  ;;  %v411_v40 = vsub.f32 0.0, %v5037_v35 }
 0x10b   :  { %v447_v41 = vmul.f32 1.442695, %v410_v37  ;;  %v412_v42 = vsub.f32 0.0, %v5041_v38 }
 0x10c   :  { %4480 = vpow2.f32 %v445_v39  ;;  %v449_v43 = vmul.f32 1.442695, %v411_v40 }
 0x10d   :  { %4482 = vpow2.f32 %v447_v41  ;;  %v451_v44 = vmul.f32 1.442695, %v412_v42  ;;  %v346_v45 = vpop.f32.mrb[8].mxu0 }
 0x10e   :  { %v4473_v46 = vpop.eup %4472  ;;  %4484 = vpow2.f32 %v449_v43  ;;  %v5046_v47 = vadd.f32 %v346_v45, %v5008_v11  ;;  %v348_v48 = vpop.f32.mrb[9].mxu0 }
 0x10f   :  { %v4475_v49 = vpop.eup %4474  ;;  %v501_v50 = vadd.f32 1.0, %v4473_v46  ;;  %4486 = vpow2.f32 %v451_v44  ;;  %v5049_v51 = vadd.f32 %v348_v48, %v5011_v12  ;;  %v350_v52 = vpop.f32.mrb[10].mxu0 }
 0x110   :  { %v4477_v53 = vpop.eup %4476  ;;  %v502_v54 = vadd.f32 1.0, %v4475_v49  ;;  %v413_v55 = vsub.f32 0.0, %v5046_v47  ;;  %v5053_v56 = vadd.f32 %v350_v52, %v5008_v11  ;;  %v352_v57 = vpop.f32.mrb[11].mxu0 }
 0x111   :  { %v4479_v58 = vpop.eup %4478  ;;  %4488 = vrcp.f32 %v501_v50  ;;  %v503_v59 = vadd.f32 1.0, %v4477_v53  ;;  %v414_v60 = vsub.f32 0.0, %v5049_v51  ;;  %v5057_v61 = vadd.f32 %v352_v57, %v5011_v12 }
 0x112   :  { %4490 = vrcp.f32 %v502_v54  ;;  %v504_v62 = vadd.f32 1.0, %v4479_v58  ;;  %v453_v63 = vmul.f32 1.442695, %v413_v55  ;;  %v415_v0 = vsub.f32 0.0, %v5053_v56 }
 0x113   :  { %4492 = vrcp.f32 %v503_v59  ;;  %v455_v1 = vmul.f32 1.442695, %v414_v60  ;;  %v416_v2 = vsub.f32 0.0, %v5057_v61 }
 0x114   :  { %4494 = vrcp.f32 %v504_v62  ;;  %v457_v3 = vmul.f32 1.442695, %v415_v0 }
 0x115   :  { %4496 = vpow2.f32 %v453_v63  ;;  %v459_v4 = vmul.f32 1.442695, %v416_v2  ;;  %v356_v9 = vpop.f32.mrb[12].mxu0 }
 0x116   :  { %v4481_v13 = vpop.eup %4480  ;;  %4498 = vpow2.f32 %v455_v1  ;;  %v5062_v15 = vadd.f32 %v356_v9, %v5008_v11  ;;  %v358_v17 = vpop.f32.mrb[13].mxu0 }
 0x117   :  { %v4483_v18 = vpop.eup %4482  ;;  %v505_v20 = vadd.f32 1.0, %v4481_v13  ;;  %4500 = vpow2.f32 %v457_v3  ;;  %v5065_v21 = vadd.f32 %v358_v17, %v5011_v12  ;;  %v360_v23 = vpop.f32.mrb[14].mxu0 }
 0x118   :  { %v4485_v24 = vpop.eup %4484  ;;  %v506_v25 = vadd.f32 1.0, %v4483_v18  ;;  %4502 = vpow2.f32 %v459_v4  ;;  %v417_v26 = vsub.f32 0.0, %v5062_v15  ;;  %v5069_v27 = vadd.f32 %v360_v23, %v5008_v11  ;;  %v362_v28 = vpop.f32.mrb[15].mxu0 }
 0x119   :  { %v4487_v29 = vpop.eup %4486  ;;  %4504 = vrcp.f32 %v505_v20  ;;  %v507_v31 = vadd.f32 1.0, %v4485_v24  ;;  %v418_v33 = vsub.f32 0.0, %v5065_v21  ;;  %v5073_v34 = vadd.f32 %v362_v28, %v5011_v12 }
 0x11a   :  { %4506 = vrcp.f32 %v506_v25  ;;  %v508_v36 = vadd.f32 1.0, %v4487_v29  ;;  %v461_v37 = vmul.f32 1.442695, %v417_v26  ;;  %v419_v39 = vsub.f32 0.0, %v5069_v27 }
 0x11b   :  { %v4489_v40 = vpop.eup %4488  ;;  %4508 = vrcp.f32 %v507_v31  ;;  %v463_v41 = vmul.f32 1.442695, %v418_v33  ;;  %v420_v42 = vsub.f32 0.0, %v5073_v34  ;;  %v4168_v31 = vld [vmem:[%s6170_s3 + $0x100] ss:$8 sps:$4 sm:$0xff]  }
 0x11c   :  { %v4491_v43 = vpop.eup %4490  ;;  %4510 = vrcp.f32 %v508_v36  ;;  %v465_v44 = vmul.f32 1.442695, %v419_v39  ;;  %v5078_v50 = vmul.f32 %v4489_v40, %v5014_v14 }
 0x11d   :  { %v4493_v45 = vpop.eup %4492  ;;  %4512 = vpow2.f32 %v461_v37  ;;  %v467_v46 = vmul.f32 1.442695, %v420_v42  ;;  %v366_v48 = vpop.f32.mrb[16].mxu0  ;;  %v5087_v57 = vmul.f32 %v4491_v43, %v5017_v16 }
 0x11e   :  { %v4495_v49 = vpop.eup %4494  ;;  %v5081_v52 = vmul.f32 %v4493_v45, %v5021_v19  ;;  %4514 = vpow2.f32 %v463_v41  ;;  %v5084_v53 = vadd.f32 %v366_v48, %v5008_v11  ;;  %v368_v54 = vpop.f32.mrb[17].mxu0 }
 0x11f   :  { %v4497_v55 = vpop.eup %4496  ;;  %v5090_v58 = vmul.f32 %v4495_v49, %v5025_v22  ;;  %4516 = vpow2.f32 %v465_v44  ;;  %v5093_v59 = vadd.f32 %v368_v54, %v5011_v12  ;;  %v370_v14 = vpop.f32.mrb[18].mxu0 }
 0x120   :  { %v4499_v60 = vpop.eup %4498  ;;  %v509_v19 = vadd.f32 1.0, %v4497_v55  ;;  %4518 = vpow2.f32 %v467_v46  ;;  %v421_v62 = vsub.f32 0.0, %v5084_v53  ;;  %v5097_v63 = vadd.f32 %v370_v14, %v5008_v11  ;;  %v372_v0 = vpop.f32.mrb[19].mxu0 }
 0x121   :  { %v4501_v1 = vpop.eup %4500  ;;  %v510_v16 = vadd.f32 1.0, %v4499_v60  ;;  %v422_v2 = vsub.f32 0.0, %v5093_v59  ;;  %v5101_v22 = vadd.f32 %v372_v0, %v5011_v12  ;;  %v3839_v3 = vpack.c.bf16 %v5090_v58, %v5081_v52 }
 0x122   :  { %v4503_v4 = vpop.eup %4502  ;;  %4520 = vrcp.f32 %v509_v19  ;;  %v511_v9 = vadd.f32 1.0, %v4501_v1  ;;  %v469_v13 = vmul.f32 1.442695, %v421_v62  ;;  %v423_v17 = vsub.f32 0.0, %v5097_v63  ;;  %v4171_v19 = vld [vmem:[%s6170_s3 + $0x110] ss:$8 sps:$4 sm:$0xff]  }
 0x123   :  { %v4505_v18 = vpop.eup %4504  ;;  %4522 = vrcp.f32 %v510_v16  ;;  %v512_v20 = vadd.f32 1.0, %v4503_v4  ;;  %v471_v23 = vmul.f32 1.442695, %v422_v2  ;;  %v424_v24 = vsub.f32 0.0, %v5101_v22  ;;  %v4176_v2 = vld [vmem:[%s6170_s3 + $0x124] ss:$8 sps:$4 sm:$0xff]  }
 0x124   :  { %v4507_v25 = vpop.eup %4506  ;;  %v5108_v26 = vmul.f32 %v4505_v18, %v5030_v30  ;;  %4524 = vrcp.f32 %v511_v9  ;;  %v473_v28 = vmul.f32 1.442695, %v423_v17  ;;  %v3524_v29 = vcombine.high %v6183_v5, %v3839_v3  ;;  %v4173_v30 = vld [vmem:[%s6170_s3 + $0x114] ss:$8 sps:$4 sm:$0xff]  }
 0x125   :  { %v4509_v33 = vpop.eup %4508  ;;  %v5115_v36 = vmul.f32 %v4507_v25, %v5033_v32  ;;  %4526 = vrcp.f32 %v512_v20  ;;  %v475_v37 = vmul.f32 1.442695, %v424_v24  ;;  %v376_v39 = vpop.f32.mrb[20].mxu0  ;;  %v3523_v40 = vcombine.low %v6183_v5, %v3839_v3  ;;  %v4174_v25 = vld [vmem:[%s6170_s3 + $0x120] ss:$8 sps:$4 sm:$0xff]  }
 0x126   :  { %v4511_v41 = vpop.eup %4510  ;;  %v3868_v42 = vpack.c.bf16 %v5108_v26, %v5078_v50  ;;  %v5124_v43 = vmul.f32 %v4509_v33, %v5037_v35  ;;  %4528 = vpow2.f32 %v469_v13  ;;  %v5127_v32 = vadd.f32 %v376_v39, %v5008_v11  ;;  %1449 = vmatprep.mubr.bf16.mxu1 %v3524_v29  ;;  %v378_v44 = vpop.f32.mrb[21].mxu0  ;;  %v4222_v50 = vld [vmem:[%s6170_s3 + $0x220] ss:$8 sps:$4 sm:$0xff]   ;;  %v4227_v26 = vld [vmem:[%s6170_s3 + $0x234] ss:$8 sps:$4 sm:$0xff]  }
 0x127   :  { %v4513_v45 = vpop.eup %4512  ;;  %v5130_v46 = vmul.f32 %v4511_v41, %v5041_v38  ;;  %4530 = vpow2.f32 %v471_v23  ;;  %v5133_v48 = vadd.f32 %v378_v44, %v5011_v12  ;;  %1450 = vmatmul.mubr.bf16.vlgmr.msra.gmra.mrb[0].mxu1 %v3523_v40  ;;  %v380_v49 = vpop.f32.mrb[22].mxu0  ;;  %v3869_v35 = vpack.c.bf16 %v5115_v36, %v5087_v57  ;;  %v4215_v57 = vld [vmem:[%s6170_s3 + $0x1f4] ss:$8 sps:$4 sm:$0xff]  }
 0x128   :  { %v4515_v54 = vpop.eup %4514  ;;  %v3870_v55 = vpack.c.bf16 %v5124_v43, %v5081_v52  ;;  %v513_v14 = vadd.f32 1.0, %v4513_v45  ;;  %4532 = vpow2.f32 %v473_v28  ;;  %v425_v60 = vsub.f32 0.0, %v5127_v32  ;;  %1491 = vmatpush1.bf16.msra.mxu1 %v4168_v31  ;;  %v382_v38 = vpop.f32.mrb[23].mxu0  ;;  %v4284_v52 = vld [vmem:[%s6172_s5 + $0x64] ss:$8 sps:$4 sm:$0xff]  }
 0x129   :  { %v4517_v62 = vpop.eup %4516  ;;  %v514_v0 = vadd.f32 1.0, %v4515_v54  ;;  %4534 = vpow2.f32 %v475_v37  ;;  %v426_v1 = vsub.f32 0.0, %v5133_v48  ;;  %v5145_v16 = vadd.f32 %v380_v49, %v5008_v11  ;;  %1492 = vmatprep.subr.bf16.mxu1 %v4173_v30  ;;  %v4179_v37 = vld [vmem:[%s6170_s3 + $0x134] ss:$8 sps:$4 sm:$0xff]  }
 0x12a   :  { %v4519_v3 = vpop.eup %4518  ;;  %4536 = vrcp.f32 %v513_v14  ;;  %v515_v4 = vadd.f32 1.0, %v4517_v62  ;;  %v477_v9 = vmul.f32 1.442695, %v425_v60  ;;  %v5151_v13 = vadd.f32 %v382_v38, %v5011_v12 }
 0x12b   :  { %4538 = vrcp.f32 %v514_v0  ;;  %v516_v17 = vadd.f32 1.0, %v4519_v3  ;;  %v479_v18 = vmul.f32 1.442695, %v426_v1  ;;  %v427_v20 = vsub.f32 0.0, %v5145_v16  ;;  %v4182_v3 = vld [vmem:[%s6170_s3 + $0x144] ss:$8 sps:$4 sm:$0xff]  }
 0x12c   :  { %v4521_v23 = vpop.eup %4520  ;;  %4540 = vrcp.f32 %v515_v4  ;;  %v428_v24 = vsub.f32 0.0, %v5151_v13  ;;  %1493 = vmatpush1.bf16.msra.mxu1 %v4171_v19  ;;  %v3871_v28 = vpack.c.bf16 %v5130_v46, %v5090_v58  ;;  %v4245_v58 = vld [vmem:[%s6170_s3 + $0x294] ss:$8 sps:$4 sm:$0xff]  }
 0x12d   :  { %v5160_v29 = vpop.eup %4522  ;;  %4542 = vrcp.f32 %v516_v17  ;;  %v481_v31 = vmul.f32 1.442695, %v427_v20  ;;  %v386_v33 = vpop.f32.mrb[24].mxu0  ;;  %1494 = vmatprep.subr.bf16.mxu1 %v4176_v2 }
 0x12e   :  { %v4525_v39 = vpop.eup %4524  ;;  %4544 = vpow2.f32 %v477_v9  ;;  %v483_v40 = vmul.f32 1.442695, %v428_v24  ;;  %v5166_v30 = vadd.f32 %v386_v33, %v5008_v11  ;;  %v388_v41 = vpop.f32.mrb[25].mxu0 }
 0x12f   :  { %v4527_v44 = vpop.eup %4526  ;;  %v5169_v45 = vmul.f32 %v4525_v39, %v5053_v56  ;;  %4546 = vpow2.f32 %v479_v18  ;;  %v5172_v49 = vadd.f32 %v388_v41, %v5011_v12  ;;  %v390_v54 = vpop.f32.mrb[26].mxu0  ;;  %v4177_v56 = vld [vmem:[%s6170_s3 + $0x130] ss:$8 sps:$4 sm:$0xff]   ;;  %v4180_v41 = vld [vmem:[%s6170_s3 + $0x140] ss:$8 sps:$4 sm:$0xff]  }
 0x130   :  { %v4529_v14 = vpop.eup %4528  ;;  %v5175_v60 = vmul.f32 %v4527_v44, %v5057_v61  ;;  %4548 = vpow2.f32 %v481_v31  ;;  %v429_v38 = vsub.f32 0.0, %v5166_v30  ;;  %1495 = vmatpush1.bf16.msra.mxu1 %v4174_v25  ;;  %v5179_v19 = vadd.f32 %v390_v54, %v5008_v11  ;;  %v392_v62 = vpop.f32.mrb[27].mxu0 }
 0x131   :  { %v4531_v0 = vpop.eup %4530  ;;  %v517_v1 = vadd.f32 1.0, %v4529_v14  ;;  %4550 = vpow2.f32 %v483_v40  ;;  %v430_v2 = vsub.f32 0.0, %v5172_v49  ;;  %v5186_v61 = vadd.f32 %v392_v62, %v5011_v12  ;;  %1496 = vmatprep.subr.bf16.mxu1 %v4179_v37 }
 0x132   :  { %v4533_v4 = vpop.eup %4532  ;;  %v518_v9 = vadd.f32 1.0, %v4531_v0  ;;  %v431_v17 = vsub.f32 0.0, %v5179_v19  ;;  %v3873_v18 = vpack.c.bf16 %v5175_v60, %v5130_v46  ;;  %v485_v25 = vmul.f32 1.442695, %v429_v38  ;;  %v4243_v46 = vld [vmem:[%s6170_s3 + $0x290] ss:$8 sps:$4 sm:$0xff]  }
 0x133   :  { %v4535_v20 = vpop.eup %4534  ;;  %4552 = vrcp.f32 %v517_v1  ;;  %v519_v24 = vadd.f32 1.0, %v4533_v4  ;;  %v432_v31 = vsub.f32 0.0, %v5186_v61  ;;  %v487_v39 = vmul.f32 1.442695, %v430_v2 }
 0x134   :  { %v4537_v33 = vpop.eup %4536  ;;  %4554 = vrcp.f32 %v518_v9  ;;  %v520_v37 = vadd.f32 1.0, %v4535_v20  ;;  %1497 = vmatpush1.bf16.msra.mxu1 %v4177_v56  ;;  %1459 = vmatprep.mubr.bf16.mxu1 %v3873_v18  ;;  %v3872_v40 = vpack.c.bf16 %v5169_v45, %v5124_v43  ;;  %v5201_v54 = vmul.f32 %v4521_v23, %v5046_v47  ;;  %v4185_v56 = vld [vmem:[%s6170_s3 + $0x154] ss:$8 sps:$4 sm:$0xff]   ;;  %v4282_v43 = vld [vmem:[%s6172_s5 + $0x60] ss:$8 sps:$4 sm:$0xff]  }
 0x135   :  { %v4539_v44 = vpop.eup %4538  ;;  %v5204_v14 = vmul.f32 %v4537_v33, %v5062_v15  ;;  %4556 = vrcp.f32 %v519_v24  ;;  %v489_v38 = vmul.f32 1.442695, %v431_v17  ;;  %v396_v62 = vpop.f32.mrb[28].mxu0  ;;  %1498 = vmatprep.subr.bf16.mxu1 %v4182_v3  ;;  %v491_v2 = vmul.f32 1.442695, %v432_v31 }
 0x136   :  { %v4541_v0 = vpop.eup %4540  ;;  %v5210_v1 = vmul.f32 %v4539_v44, %v5065_v21  ;;  %4558 = vrcp.f32 %v520_v37  ;;  %1460 = vmatmul.mubr.bf16.gmra.mrb[4].mxu1 %v3872_v40  ;;  %v5213_v47 = vadd.f32 %v396_v62, %v5008_v11  ;;  %v398_v15 = vpop.f32.mrb[29].mxu0  ;;  %v5242_v40 = vmul.f32 %v5160_v29, %v5049_v51 }
 0x137   :  { %v4543_v23 = vpop.eup %4542  ;;  %v5216_v4 = vmul.f32 %v4541_v0, %v5069_v27  ;;  %4560 = vpow2.f32 %v485_v25  ;;  %v5219_v3 = vadd.f32 %v398_v15, %v5011_v12  ;;  %v400_v9 = vpop.f32.mrb[30].mxu0  ;;  %v3874_v21 = vpack.c.bf16 %v5204_v14, %v5201_v54  ;;  %v4183_v25 = vld [vmem:[%s6170_s3 + $0x150] ss:$8 sps:$4 sm:$0xff]   ;;  %v4228_v54 = vld [vmem:[%s6170_s3 + $0x240] ss:$8 sps:$4 sm:$0xff]  }
 0x138   :  { %v4545_v17 = vpop.eup %4544  ;;  %v5224_v18 = vmul.f32 %v4543_v23, %v5073_v34  ;;  %4562 = vpow2.f32 %v487_v39  ;;  %v433_v20 = vsub.f32 0.0, %v5213_v47  ;;  %1499 = vmatpush1.bf16.msra.mxu1 %v4180_v41  ;;  %v5228_v24 = vadd.f32 %v400_v9, %v5008_v11  ;;  %v402_v27 = vpop.f32.mrb[31].mxu0  ;;  %v4188_v39 = vld [vmem:[%s6170_s3 + $0x164] ss:$8 sps:$4 sm:$0xff]   ;;  %v4186_v23 = vld [vmem:[%s6170_s3 + $0x160] ss:$8 sps:$4 sm:$0xff]  }
 0x139   :  { %v4547_v31 = vpop.eup %4546  ;;  %v521_v33 = vadd.f32 1.0, %v4545_v17  ;;  %4564 = vpow2.f32 %v489_v38  ;;  %v434_v37 = vsub.f32 0.0, %v5219_v3  ;;  %v5235_v34 = vadd.f32 %v402_v27, %v5011_v12  ;;  %1500 = vmatprep.subr.bf16.mxu1 %v4185_v56  ;;  %v4191_v9 = vld [vmem:[%s6170_s3 + $0x174] ss:$8 sps:$4 sm:$0xff]  }
 0x13a   :  { %v4549_v11 = vpop.eup %4548  ;;  %v522_v41 = vadd.f32 1.0, %v4547_v31  ;;  %4566 = vpow2.f32 %v491_v2  ;;  %v435_v44 = vsub.f32 0.0, %v5228_v24  ;;  %v493_v0 = vmul.f32 1.442695, %v433_v20  ;;  %v4233_v14 = vld [vmem:[%s6170_s3 + $0x254] ss:$8 sps:$4 sm:$0xff]  }
 0x13b   :  { %v4551_v38 = vpop.eup %4550  ;;  %4568 = vrcp.f32 %v521_v33  ;;  %v523_v62 = vadd.f32 1.0, %v4549_v11  ;;  %v436_v12 = vsub.f32 0.0, %v5235_v34  ;;  %v495_v15 = vmul.f32 1.442695, %v434_v37  ;;  %v4189_v33 = vld [vmem:[%s6170_s3 + $0x170] ss:$8 sps:$4 sm:$0xff]  }
 0x13c   :  { %4570 = vrcp.f32 %v522_v41  ;;  %v524_v56 = vadd.f32 1.0, %v4551_v38  ;;  %1501 = vmatpush1.bf16.msra.mxu1 %v4183_v25  ;;  %v3875_v51 = vpack.c.bf16 %v5210_v1, %v5242_v40  ;;  %v497_v2 = vmul.f32 1.442695, %v435_v44  ;;  %v4194_v37 = vld [vmem:[%s6170_s3 + $0x184] ss:$8 sps:$4 sm:$0xff]  }
 0x13d   :  { %v4553_v29 = vpop.eup %4552  ;;  %4572 = vrcp.f32 %v523_v62  ;;  %1502 = vmatprep.subr.bf16.mxu1 %v4188_v39  ;;  %v3877_v17 = vpack.c.bf16 %v5224_v18, %v5175_v60  ;;  %v499_v25 = vmul.f32 1.442695, %v436_v12  ;;  %v4264_v41 = vld [vmem:[%s6172_s5] ss:$8 sps:$4 sm:$0xff]   ;;  %v4266_v62 = vld [vmem:[%s6172_s5 + $0x4] ss:$8 sps:$4 sm:$0xff]  }
 0x13e   :  { %v4555_v27 = vpop.eup %4554  ;;  %4574 = vrcp.f32 %v524_v56  ;;  %v4269_v12 = vld [vmem:[%s6172_s5 + $0x14] ss:$8 sps:$4 sm:$0xff]   ;;  %2440 = vmatprep.subr.bf16.mxu0 %v4266_v62  ;;  %v5296_v20 = vmul.f32 %v4553_v29, %v5084_v53  ;;  %v4270_v29 = vld [vmem:[%s6172_s5 + $0x20] ss:$8 sps:$4 sm:$0xff]   ;;  %v4230_v1 = vld [vmem:[%s6170_s3 + $0x244] ss:$8 sps:$4 sm:$0xff]  }
 0x13f   :  { %v4557_v31 = vpop.eup %4556  ;;  %4576 = vpow2.f32 %v493_v0  ;;  %2441 = vmatpush1.bf16.msra.mxu0 %v4264_v41  ;;  %v4195_v41 = vld [vmem:[%s6170_s3 + $0x190] ss:$8 sps:$4 sm:$0xff]   ;;  %v4236_v40 = vld [vmem:[%s6170_s3 + $0x264] ss:$8 sps:$4 sm:$0xff]  }
 0x140   :  { %v4559_v39 = vpop.eup %4558  ;;  %v5265_v11 = vmul.f32 %v4557_v31, %v5097_v63  ;;  %4578 = vpow2.f32 %v495_v15  ;;  %1503 = vmatpush1.bf16.msra.mxu1 %v4186_v23  ;;  %v4192_v15 = vld [vmem:[%s6170_s3 + $0x180] ss:$8 sps:$4 sm:$0xff]   ;;  %v4197_v23 = vld [vmem:[%s6170_s3 + $0x194] ss:$8 sps:$4 sm:$0xff]   ;;  %2442 = vmatprep.subr.bf16.mxu0 %v4269_v12  ;;  %v4290_v60 = vld [vmem:[%s6172_s5 + $0x84] ss:$8 sps:$4 sm:$0xff]  }
 0x141   :  { %v4561_v44 = vpop.eup %4560  ;;  %v5271_v38 = vmul.f32 %v4559_v39, %v5101_v22  ;;  %4580 = vpow2.f32 %v497_v2  ;;  %1504 = vmatprep.subr.bf16.mxu1 %v4191_v9 }
 0x142   :  { %v4563_v0 = vpop.eup %4562  ;;  %4582 = vpow2.f32 %v499_v25  ;;  %v3878_v63 = vpack.c.bf16 %v5265_v11, %v5216_v4  ;;  %v4267_v25 = vld [vmem:[%s6172_s5 + $0x10] ss:$8 sps:$4 sm:$0xff]  }
 0x143   :  { %v4565_v56 = vpop.eup %4564  ;;  %v3879_v22 = vpack.c.bf16 %v5271_v38, %v5224_v18  ;;  %v526_v53 = vadd.f32 1.0, %v4563_v0  ;;  %2443 = vmatpush1.bf16.msra.mxu0 %v4267_v25  ;;  %v4293_v18 = vld [vmem:[%s6172_s5 + $0x94] ss:$8 sps:$4 sm:$0xff]  }
 0x144   :  { %v4567_v2 = vpop.eup %4566  ;;  %v527_v9 = vadd.f32 1.0, %v4565_v56  ;;  %1505 = vmatpush1.bf16.msra.mxu1 %v4189_v33  ;;  %v525_v33 = vadd.f32 1.0, %v4561_v44  ;;  %v5305_v56 = vmul.f32 %v4555_v27, %v5093_v59  ;;  %2444 = vmatprep.subr.bf16.mxu0 %v4272_v6  ;;  %v4203_v6 = vld [vmem:[%s6170_s3 + $0x1b4] ss:$8 sps:$4 sm:$0xff]  }
 0x145   :  { %v4569_v31 = vpop.eup %4568  ;;  %v528_v39 = vadd.f32 1.0, %v4567_v2  ;;  %1469 = vmatprep.mubr.bf16.mxu1 %v3879_v22  ;;  %1506 = vmatprep.subr.bf16.mxu1 %v4194_v37 }
 0x146   :  { %v4571_v5 = vpop.eup %4570  ;;  %v5299_v62 = vmul.f32 %v4569_v31, %v5127_v32  ;;  %4584 = vrcp.f32 %v527_v9  ;;  %1470 = vmatmul.mubr.bf16.gmra.mrb[8].mxu1 %v3878_v63  ;;  %v4200_v32 = vld [vmem:[%s6170_s3 + $0x1a4] ss:$8 sps:$4 sm:$0xff]  }
 0x147   :  { %v4573_v37 = vpop.eup %4572  ;;  %v5308_v22 = vmul.f32 %v4571_v5, %v5133_v48  ;;  %4586 = vrcp.f32 %v528_v39  ;;  %v4275_v5 = vld [vmem:[%s6172_s5 + $0x34] ss:$8 sps:$4 sm:$0xff]   ;;  %v4278_v31 = vld [vmem:[%s6172_s5 + $0x44] ss:$8 sps:$4 sm:$0xff]   ;;  %2445 = vmatpush1.bf16.msra.mxu0 %v4270_v29 }
 0x148   :  { %v4575_v44 = vpop.eup %4574  ;;  %v5317_v63 = vmul.f32 %v4573_v37, %v5145_v16  ;;  %1507 = vmatpush1.bf16.msra.mxu1 %v4192_v15  ;;  %v3880_v59 = vpack.c.bf16 %v5299_v62, %v5296_v20  ;;  %4588 = vrcp.f32 %v525_v33  ;;  %v4198_v15 = vld [vmem:[%s6170_s3 + $0x1a0] ss:$8 sps:$4 sm:$0xff]   ;;  %2446 = vmatprep.subr.bf16.mxu0 %v4275_v5  ;;  %v4239_v20 = vld [vmem:[%s6170_s3 + $0x274] ss:$8 sps:$4 sm:$0xff]   ;;  %v4237_v62 = vld [vmem:[%s6170_s3 + $0x270] ss:$8 sps:$4 sm:$0xff]  }
 0x149   :  { %v4577_v48 = vpop.eup %4576  ;;  %v5325_v27 = vmul.f32 %v4575_v44, %v5151_v13  ;;  %1508 = vmatprep.subr.bf16.mxu1 %v4197_v23  ;;  %v3881_v0 = vpack.c.bf16 %v5308_v22, %v5305_v56  ;;  %v4273_v13 = vld [vmem:[%s6172_s5 + $0x30] ss:$8 sps:$4 sm:$0xff]   ;;  %4590 = vrcp.f32 %v526_v53  ;;  %v4276_v44 = vld [vmem:[%s6172_s5 + $0x40] ss:$8 sps:$4 sm:$0xff]   ;;  %v4242_v56 = vld [vmem:[%s6170_s3 + $0x284] ss:$8 sps:$4 sm:$0xff]  }
 0x14a   :  { %v4579_v16 = vpop.eup %4578  ;;  %v529_v12 = vadd.f32 1.0, %v4577_v48  ;;  %v3882_v2 = vpack.c.bf16 %v5317_v63, %v5265_v11  ;;  %v4201_v53 = vld [vmem:[%s6170_s3 + $0x1b0] ss:$8 sps:$4 sm:$0xff]   ;;  %v4206_v48 = vld [vmem:[%s6170_s3 + $0x1c4] ss:$8 sps:$4 sm:$0xff]  }
 0x14b   :  { %v4581_v9 = vpop.eup %4580  ;;  %v530_v23 = vadd.f32 1.0, %v4579_v16  ;;  %v3883_v25 = vpack.c.bf16 %v5325_v27, %v5271_v38  ;;  %2447 = vmatpush1.bf16.msra.mxu0 %v4273_v13  ;;  %v4240_v22 = vld [vmem:[%s6170_s3 + $0x280] ss:$8 sps:$4 sm:$0xff]   ;;  %v4296_v11 = vld [vmem:[%s6172_s5 + $0xa4] ss:$8 sps:$4 sm:$0xff]  }
 0x14c   :  { %v4583_v39 = vpop.eup %4582  ;;  %4592 = vrcp.f32 %v529_v12  ;;  %v531_v33 = vadd.f32 1.0, %v4581_v9  ;;  %1509 = vmatpush1.bf16.msra.mxu1 %v4195_v41  ;;  %v4281_v41 = vld [vmem:[%s6172_s5 + $0x54] ss:$8 sps:$4 sm:$0xff]   ;;  %2448 = vmatprep.subr.bf16.mxu0 %v4278_v31  ;;  %v4204_v12 = vld [vmem:[%s6170_s3 + $0x1c0] ss:$8 sps:$4 sm:$0xff]  }
 0x14d   :  { %4594 = vrcp.f32 %v530_v23  ;;  %v532_v37 = vadd.f32 1.0, %v4583_v39  ;;  %1510 = vmatprep.subr.bf16.mxu1 %v4200_v32  ;;  %v4207_v31 = vld [vmem:[%s6170_s3 + $0x1d0] ss:$8 sps:$4 sm:$0xff]   ;;  %v4294_v38 = vld [vmem:[%s6172_s5 + $0xa0] ss:$8 sps:$4 sm:$0xff]  }
 0x14e   :  { %4596 = vrcp.f32 %v531_v33 }
 0x14f   :  { %4598 = vrcp.f32 %v532_v37  ;;  %2449 = vmatpush1.bf16.msra.mxu0 %v4276_v44 }
 0x150   :  { %v4585_v32 = vpop.eup %4584  ;;  %1511 = vmatpush1.bf16.msra.mxu1 %v4198_v15  ;;  %v4209_v15 = vld [vmem:[%s6170_s3 + $0x1d4] ss:$8 sps:$4 sm:$0xff]   ;;  %2450 = vmatprep.subr.bf16.mxu0 %v4281_v41 }
 0x151   :  { %v4587_v29 = vpop.eup %4586  ;;  %v5358_v5 = vmul.f32 %v4585_v32, %v5179_v19  ;;  %1512 = vmatprep.subr.bf16.mxu1 %v4203_v6  ;;  %v4279_v19 = vld [vmem:[%s6172_s5 + $0x50] ss:$8 sps:$4 sm:$0xff]  }
 0x152   :  { %v5361_v16 = vmul.f32 %v4587_v29, %v5186_v61  ;;  %v4589_v13 = vpop.eup %4588 }
 0x153   :  { %v3884_v9 = vpack.c.bf16 %v5358_v5, %v5317_v63  ;;  %v4591_v23 = vpop.eup %4590  ;;  %v589_v33 = vmul.f32 %v4589_v13, %v5166_v30  ;;  %2451 = vmatpush1.bf16.msra.mxu0 %v4279_v19  ;;  %v4224_v19 = vld [vmem:[%s6170_s3 + $0x224] ss:$8 sps:$4 sm:$0xff]   ;;  %v4249_v13 = vld [vmem:[%s6170_s3 + $0x2b0] ss:$8 sps:$4 sm:$0xff]   ;;  %v4299_v63 = vld [vmem:[%s6172_s5 + $0xb4] ss:$8 sps:$4 sm:$0xff]  }
 0x154   :  { %1513 = vmatpush1.bf16.msra.mxu1 %v4201_v53  ;;  %v3885_v61 = vpack.c.bf16 %v5361_v16, %v5325_v27  ;;  %v4212_v53 = vld [vmem:[%s6170_s3 + $0x1e4] ss:$8 sps:$4 sm:$0xff]   ;;  %2452 = vmatprep.subr.bf16.mxu0 %v4284_v52  ;;  %v4297_v27 = vld [vmem:[%s6172_s5 + $0xb0] ss:$8 sps:$4 sm:$0xff]  }
 0x155   :  { %1514 = vmatprep.subr.bf16.mxu1 %v4206_v48  ;;  %v590_v48 = vmul.f32 %v4591_v23, %v5172_v49  ;;  %v4210_v49 = vld [vmem:[%s6170_s3 + $0x1e0] ss:$8 sps:$4 sm:$0xff]  }
 0x156   :  { %v4593_v6 = vpop.eup %4592  ;;  %1479 = vmatprep.mubr.bf16.mxu1 %v3885_v61  ;;  %v4254_v61 = vld [vmem:[%s6170_s3 + $0x2c4] ss:$8 sps:$4 sm:$0xff]   ;;  %v4252_v23 = vld [vmem:[%s6170_s3 + $0x2c0] ss:$8 sps:$4 sm:$0xff]  }
 0x157   :  { %v4595_v39 = vpop.eup %4594  ;;  %v593_v37 = vmul.f32 %v4593_v6, %v5213_v47  ;;  %1480 = vmatmul.mubr.bf16.gmra.mrb[12].mxu1 %v3884_v9  ;;  %v4221_v9 = vld [vmem:[%s6170_s3 + $0x214] ss:$8 sps:$4 sm:$0xff]   ;;  %2453 = vmatpush1.bf16.msra.mxu0 %v4282_v43 }
 0x158   :  { %v4597_v44 = vpop.eup %4596  ;;  %v594_v41 = vmul.f32 %v4595_v39, %v5219_v3  ;;  %1522 = vmatprep.mubr.bf16.mxu1 %v3869_v35  ;;  %1515 = vmatpush1.bf16.msra.mxu1 %v4204_v12  ;;  %v4216_v12 = vld [vmem:[%s6170_s3 + $0x200] ss:$8 sps:$4 sm:$0xff]   ;;  %v4257_v6 = vld [vmem:[%s6170_s3 + $0x2d4] ss:$8 sps:$4 sm:$0xff]   ;;  %v4260_v39 = vld [vmem:[%s6170_s3 + $0x2e4] ss:$8 sps:$4 sm:$0xff]  }
 0x159   :  { %v4599_v32 = vpop.eup %4598  ;;  %v5390_v30 = vmul.f32 %v4597_v44, %v5228_v24  ;;  %1516 = vmatprep.subr.bf16.mxu1 %v4209_v15  ;;  %v3886_v47 = vpack.c.bf16 %v593_v37, %v589_v33  ;;  %v4213_v24 = vld [vmem:[%s6170_s3 + $0x1f0] ss:$8 sps:$4 sm:$0xff]   ;;  %v4258_v33 = vld [vmem:[%s6170_s3 + $0x2e0] ss:$8 sps:$4 sm:$0xff]   ;;  %v4263_v37 = vld [vmem:[%s6170_s3 + $0x2f4] ss:$8 sps:$4 sm:$0xff]   ;;  %v6185_v44 = vpack.c.bf16 %v5216_v4, %v5169_v45 }
 0x15a   :  { %v5393_v29 = vmul.f32 %v4599_v32, %v5235_v34  ;;  %v3887_v3 = vpack.c.bf16 %v594_v41, %v590_v48  ;;  %v4218_v34 = vld [vmem:[%s6170_s3 + $0x204] ss:$8 sps:$4 sm:$0xff]   ;;  %v4219_v15 = vld [vmem:[%s6170_s3 + $0x210] ss:$8 sps:$4 sm:$0xff]   ;;  %v4288_v4 = vld [vmem:[%s6172_s5 + $0x80] ss:$8 sps:$4 sm:$0xff]  }
 0x15b   :  { %v3888_v36 = vpack.c.bf16 %v5390_v30, %v5358_v5  ;;  %v4285_v45 = vld [vmem:[%s6172_s5 + $0x70] ss:$8 sps:$4 sm:$0xff]   ;;  %v4305_v5 = vld [vmem:[%s6172_s5 + $0xd4] ss:$8 sps:$4 sm:$0xff]   ;;  %v4308_v48 = vld [vmem:[%s6172_s5 + $0xe4] ss:$8 sps:$4 sm:$0xff]  }
 0x15c   :  { %1517 = vmatpush1.bf16.msra.mxu1 %v4207_v31  ;;  %v3889_v35 = vpack.c.bf16 %v5393_v29, %v5361_v16  ;;  %v4255_v31 = vld [vmem:[%s6170_s3 + $0x2d0] ss:$8 sps:$4 sm:$0xff]   ;;  %v4306_v41 = vld [vmem:[%s6172_s5 + $0xe0] ss:$8 sps:$4 sm:$0xff]   ;;  %v4311_v32 = vld [vmem:[%s6172_s5 + $0xf4] ss:$8 sps:$4 sm:$0xff]  }
 0x15d   :  { %1518 = vmatprep.subr.bf16.mxu1 %v4212_v53  ;;  %v4261_v53 = vld [vmem:[%s6170_s3 + $0x2f0] ss:$8 sps:$4 sm:$0xff]   ;;  %v877_v29 = vld [vmem:[%s6173_s4] sm:$0x3] }
 0x15e   :  { %v4303_v16 = vld [vmem:[%s6172_s5 + $0xd0] ss:$8 sps:$4 sm:$0xff]  }
 0x15f   :  { %v4309_v30 = vld [vmem:[%s6172_s5 + $0xf0] ss:$8 sps:$4 sm:$0xff]  }
 0x160   :  { %1519 = vmatpush1.bf16.msra.mxu1 %v4210_v49  ;;  %v5610_v49 = vrot.slane %v877_v29, %v4999_v8 }
 0x161   :  { %1520 = vmatprep.subr.bf16.mxu1 %v4215_v57 }
 0x164   :  { %1521 = vmatpush1.bf16.msra.mxu1 %v4213_v24 }
 0x165   :  { %1563 = vmatprep.subr.bf16.mxu1 %v4218_v34 }
 0x167   :  { %1523 = vmatmul.mubr.bf16.vlgmr.msra.gmra.mrb[0].mxu1 %v3868_v42  ;;  %v4225_v42 = vld [vmem:[%s6170_s3 + $0x230] ss:$8 sps:$4 sm:$0xff]  }
 0x168   :  { %1532 = vmatprep.mubr.bf16.mxu1 %v3875_v51  ;;  %1564 = vmatpush1.bf16.msra.mxu1 %v4216_v12  ;;  %v4234_v51 = vld [vmem:[%s6170_s3 + $0x260] ss:$8 sps:$4 sm:$0xff]  }
 0x169   :  { %1565 = vmatprep.subr.bf16.mxu1 %v4221_v9 }
 0x16c   :  { %1566 = vmatpush1.bf16.msra.mxu1 %v4219_v15 }
 0x16d   :  { %1567 = vmatprep.subr.bf16.mxu1 %v4224_v19 }
 0x16f   :  { %1533 = vmatmul.mubr.bf16.gmra.mrb[4].mxu1 %v3874_v21  ;;  %v4231_v21 = vld [vmem:[%s6170_s3 + $0x250] ss:$8 sps:$4 sm:$0xff]  }
 0x170   :  { %1542 = vmatprep.mubr.bf16.mxu1 %v3881_v0  ;;  %1568 = vmatpush1.bf16.msra.mxu1 %v4222_v50  ;;  %v4251_v0 = vld [vmem:[%s6170_s3 + $0x2b4] ss:$8 sps:$4 sm:$0xff]  }
 0x171   :  { %1569 = vmatprep.subr.bf16.mxu1 %v4227_v26 }
 0x174   :  { %1570 = vmatpush1.bf16.msra.mxu1 %v4225_v42 }
 0x175   :  { %1571 = vmatprep.subr.bf16.mxu1 %v4230_v1 }
 0x177   :  { %1543 = vmatmul.mubr.bf16.gmra.mrb[8].mxu1 %v3880_v59  ;;  %v4246_v59 = vld [vmem:[%s6170_s3 + $0x2a0] ss:$8 sps:$4 sm:$0xff]  }
 0x178   :  { %1552 = vmatprep.mubr.bf16.mxu1 %v3887_v3  ;;  %1572 = vmatpush1.bf16.msra.mxu1 %v4228_v54  ;;  %v5613_v3 = vrot.slane %v877_v29, %v5005_v10 }
 0x179   :  { %1573 = vmatprep.subr.bf16.mxu1 %v4233_v14 }
 0x17c   :  { %1574 = vmatpush1.bf16.msra.mxu1 %v4231_v21 }
 0x17d   :  { %1575 = vmatprep.subr.bf16.mxu1 %v4236_v40 }
 0x17f   :  { %1553 = vmatmul.mubr.bf16.gmra.mrb[12].mxu1 %v3886_v47  ;;  %v4314_v47 = vld [vmem:[%s6172_s5 + $0x104] ss:$8 sps:$4 sm:$0xff]  }
 0x180   :  { %1576 = vmatpush1.bf16.msra.mxu1 %v4234_v51  ;;  %1595 = vmatprep.mubr.bf16.mxu1 %v3871_v28  ;;  %v4248_v28 = vld [vmem:[%s6170_s3 + $0x2a4] ss:$8 sps:$4 sm:$0xff]  }
 0x181   :  { %1577 = vmatprep.subr.bf16.mxu1 %v4239_v20 }
 0x184   :  { %1578 = vmatpush1.bf16.msra.mxu1 %v4237_v62 }
 0x185   :  { %1579 = vmatprep.subr.bf16.mxu1 %v4242_v56 }
 0x188   :  { %1580 = vmatpush1.bf16.msra.mxu1 %v4240_v22 }
 0x189   :  { %1581 = vmatprep.subr.bf16.mxu1 %v4245_v58 }
 0x18c   :  { %1582 = vmatpush1.bf16.msra.mxu1 %v4243_v46 }
 0x18d   :  { %1583 = vmatprep.subr.bf16.mxu1 %v4248_v28 }
 0x190   :  { %1584 = vmatpush1.bf16.msra.mxu1 %v4246_v59 }
 0x191   :  { %1585 = vmatprep.subr.bf16.mxu1 %v4251_v0 }
 0x194   :  { %1586 = vmatpush1.bf16.msra.mxu1 %v4249_v13 }
 0x195   :  { %1587 = vmatprep.subr.bf16.mxu1 %v4254_v61 }
 0x198   :  { %1588 = vmatpush1.bf16.msra.mxu1 %v4252_v23 }
 0x199   :  { %1589 = vmatprep.subr.bf16.mxu1 %v4257_v6 }
 0x19c   :  { %1590 = vmatpush1.bf16.msra.mxu1 %v4255_v31 }
 0x19d   :  { %1591 = vmatprep.subr.bf16.mxu1 %v4260_v39 }
 0x1a0   :  { %1592 = vmatpush1.bf16.msra.mxu1 %v4258_v33 }
 0x1a1   :  { %1593 = vmatprep.subr.bf16.mxu1 %v4263_v37 }
 0x1a4   :  { %1594 = vmatpush1.bf16.msra.mxu1 %v4261_v53 }
 0x1a7   :  { %1596 = vmatmul.mubr.bf16.vlgmr.msra.gmra.mrb[0].mxu1 %v3870_v55  ;;  %v4287_v55 = vld [vmem:[%s6172_s5 + $0x74] ss:$8 sps:$4 sm:$0xff]  }
 0x1a8   :  { %1605 = vmatprep.mubr.bf16.mxu1 %v3877_v17  ;;  %2454 = vmatprep.subr.bf16.mxu0 %v4287_v55  ;;  %v4291_v17 = vld [vmem:[%s6172_s5 + $0x90] ss:$8 sps:$4 sm:$0xff]  }
 0x1a9   :  { %2455 = vmatpush1.bf16.msra.mxu0 %v4285_v45 }
 0x1aa   :  { %2456 = vmatprep.subr.bf16.mxu0 %v4290_v60 }
 0x1ad   :  { %2457 = vmatpush1.bf16.msra.mxu0 %v4288_v4 }
 0x1ae   :  { %2458 = vmatprep.subr.bf16.mxu0 %v4293_v18 }
 0x1af   :  { %1606 = vmatmul.mubr.bf16.gmra.mrb[4].mxu1 %v6185_v44 }
 0x1b0   :  { %1615 = vmatprep.mubr.bf16.mxu1 %v3883_v25  ;;  %v4300_v25 = vld [vmem:[%s6172_s5 + $0xc0] ss:$8 sps:$4 sm:$0xff]  }
 0x1b1   :  { %2459 = vmatpush1.bf16.msra.mxu0 %v4291_v17 }
 0x1b2   :  { %2460 = vmatprep.subr.bf16.mxu0 %v4296_v11 }
 0x1b5   :  { %2461 = vmatpush1.bf16.msra.mxu0 %v4294_v38 }
 0x1b6   :  { %2462 = vmatprep.subr.bf16.mxu0 %v4299_v63 }
 0x1b7   :  { %1616 = vmatmul.mubr.bf16.gmra.mrb[8].mxu1 %v3882_v2  ;;  %v4302_v2 = vld [vmem:[%s6172_s5 + $0xc4] ss:$8 sps:$4 sm:$0xff]  }
 0x1b8   :  { %1625 = vmatprep.mubr.bf16.mxu1 %v3889_v35 }
 0x1b9   :  { %2463 = vmatpush1.bf16.msra.mxu0 %v4297_v27 }
 0x1ba   :  { %2464 = vmatprep.subr.bf16.mxu0 %v4302_v2 }
 0x1bd   :  { %2465 = vmatpush1.bf16.msra.mxu0 %v4300_v25 }
 0x1be   :  { %2466 = vmatprep.subr.bf16.mxu0 %v4305_v5 }
 0x1bf   :  { %1626 = vmatmul.mubr.bf16.gmra.mrb[12].mxu1 %v3888_v36 }
 0x1c1   :  { %2467 = vmatpush1.bf16.msra.mxu0 %v4303_v16 }
 0x1c2   :  { %2468 = vmatprep.subr.bf16.mxu0 %v4308_v48 }
 0x1c5   :  { %2469 = vmatpush1.bf16.msra.mxu0 %v4306_v41 }
 0x1c6   :  { %2470 = vmatprep.subr.bf16.mxu0 %v4311_v32 }
 0x1c9   :  { %2471 = vmatpush1.bf16.msra.mxu0 %v4309_v30 }
 0x1ca   :  { %2493 = vmatprep.subr.bf16.mxu0 %v4314_v47 }
 0x27a   :  { %v1597_v57 = vpop.f32.mrb[0].mxu1 }
 0x27b   :  { %v5616_v36 = vadd.f32 %v1597_v57, %v5610_v49  ;;  %v1599_v35 = vpop.f32.mrb[1].mxu1 }
 0x27c   :  { %v5619_v24 = vadd.f32 %v1599_v35, %v5613_v3  ;;  %v1601_v34 = vpop.f32.mrb[2].mxu1 }
 0x27d   :  { %v1636_v12 = vsub.f32 0.0, %v5616_v36  ;;  %v5623_v9 = vadd.f32 %v1601_v34, %v5610_v49  ;;  %v1603_v15 = vpop.f32.mrb[3].mxu1 }
 0x27e   :  { %v1637_v19 = vsub.f32 0.0, %v5619_v24  ;;  %v5627_v50 = vadd.f32 %v1603_v15, %v5613_v3 }
 0x27f   :  { %v1652_v26 = vmul.f32 1.442695, %v1636_v12  ;;  %v1638_v42 = vsub.f32 0.0, %v5623_v9 }
 0x280   :  { %v1654_v1 = vmul.f32 1.442695, %v1637_v19  ;;  %v1639_v54 = vsub.f32 0.0, %v5627_v50 }
 0x281   :  { %4600 = vpow2.f32 %v1652_v26  ;;  %v1656_v14 = vmul.f32 1.442695, %v1638_v42 }
 0x282   :  { %4602 = vpow2.f32 %v1654_v1  ;;  %v1658_v21 = vmul.f32 1.442695, %v1639_v54  ;;  %v1607_v40 = vpop.f32.mrb[4].mxu1 }
 0x283   :  { %4604 = vpow2.f32 %v1656_v14  ;;  %v5632_v51 = vadd.f32 %v1607_v40, %v5610_v49  ;;  %v1609_v20 = vpop.f32.mrb[5].mxu1 }
 0x284   :  { %4606 = vpow2.f32 %v1658_v21  ;;  %v5635_v62 = vadd.f32 %v1609_v20, %v5613_v3  ;;  %v1611_v56 = vpop.f32.mrb[6].mxu1 }
 0x285   :  { %v1640_v22 = vsub.f32 0.0, %v5632_v51  ;;  %v5639_v58 = vadd.f32 %v1611_v56, %v5610_v49  ;;  %v1613_v46 = vpop.f32.mrb[7].mxu1 }
 0x286   :  { %v1641_v28 = vsub.f32 0.0, %v5635_v62  ;;  %v5643_v59 = vadd.f32 %v1613_v46, %v5613_v3 }
 0x287   :  { %v1660_v0 = vmul.f32 1.442695, %v1640_v22  ;;  %v1642_v13 = vsub.f32 0.0, %v5639_v58 }
 0x288   :  { %v1662_v61 = vmul.f32 1.442695, %v1641_v28  ;;  %v1643_v23 = vsub.f32 0.0, %v5643_v59 }
 0x289   :  { %4608 = vpow2.f32 %v1660_v0  ;;  %v1664_v6 = vmul.f32 1.442695, %v1642_v13 }
 0x28a   :  { %4610 = vpow2.f32 %v1662_v61  ;;  %v1666_v31 = vmul.f32 1.442695, %v1643_v23  ;;  %v1617_v39 = vpop.f32.mrb[8].mxu1 }
 0x28b   :  { %v4601_v33 = vpop.eup %4600  ;;  %4612 = vpow2.f32 %v1664_v6  ;;  %v5648_v37 = vadd.f32 %v1617_v39, %v5610_v49  ;;  %v1619_v53 = vpop.f32.mrb[9].mxu1 }
 0x28c   :  { %v4603_v44 = vpop.eup %4602  ;;  %v1684_v52 = vadd.f32 1.0, %v4601_v33  ;;  %4614 = vpow2.f32 %v1666_v31  ;;  %v5651_v43 = vadd.f32 %v1619_v53, %v5613_v3  ;;  %v1621_v55 = vpop.f32.mrb[10].mxu1 }
 0x28d   :  { %v4605_v45 = vpop.eup %4604  ;;  %v1685_v60 = vadd.f32 1.0, %v4603_v44  ;;  %v1644_v4 = vsub.f32 0.0, %v5648_v37  ;;  %v5655_v18 = vadd.f32 %v1621_v55, %v5610_v49  ;;  %v1623_v17 = vpop.f32.mrb[11].mxu1 }
 0x28e   :  { %v4607_v11 = vpop.eup %4606  ;;  %4616 = vrcp.f32 %v1684_v52  ;;  %v1686_v38 = vadd.f32 1.0, %v4605_v45  ;;  %v1645_v63 = vsub.f32 0.0, %v5651_v43  ;;  %v5659_v27 = vadd.f32 %v1623_v17, %v5613_v3 }
 0x28f   :  { %4618 = vrcp.f32 %v1685_v60  ;;  %v1687_v2 = vadd.f32 1.0, %v4607_v11  ;;  %v1668_v25 = vmul.f32 1.442695, %v1644_v4  ;;  %v1646_v5 = vsub.f32 0.0, %v5655_v18 }
 0x290   :  { %4620 = vrcp.f32 %v1686_v38  ;;  %v1670_v16 = vmul.f32 1.442695, %v1645_v63  ;;  %v1647_v48 = vsub.f32 0.0, %v5659_v27  ;;  %v6186_v4 = vmov 0  }
 0x291   :  { %4622 = vrcp.f32 %v1687_v2  ;;  %v1672_v41 = vmul.f32 1.442695, %v1646_v5  ;;  %v4317_v5 = vld [vmem:[%s6172_s5 + $0x114] ss:$8 sps:$4 sm:$0xff]  }
 0x292   :  { %4624 = vpow2.f32 %v1668_v25  ;;  %v1674_v32 = vmul.f32 1.442695, %v1647_v48  ;;  %v1627_v30 = vpop.f32.mrb[12].mxu1 }
 0x293   :  { %v4609_v47 = vpop.eup %4608  ;;  %4626 = vpow2.f32 %v1670_v16  ;;  %v5664_v29 = vadd.f32 %v1627_v30, %v5610_v49  ;;  %v1629_v57 = vpop.f32.mrb[13].mxu1 }
 0x294   :  { %v4611_v35 = vpop.eup %4610  ;;  %v1688_v34 = vadd.f32 1.0, %v4609_v47  ;;  %4628 = vpow2.f32 %v1672_v41  ;;  %v5667_v12 = vadd.f32 %v1629_v57, %v5613_v3  ;;  %v1631_v15 = vpop.f32.mrb[14].mxu1 }
 0x295   :  { %v4613_v19 = vpop.eup %4612  ;;  %v1689_v26 = vadd.f32 1.0, %v4611_v35  ;;  %4630 = vpow2.f32 %v1674_v32  ;;  %v1648_v42 = vsub.f32 0.0, %v5664_v29  ;;  %v5671_v1 = vadd.f32 %v1631_v15, %v5610_v49  ;;  %v1633_v54 = vpop.f32.mrb[15].mxu1 }
 0x296   :  { %v4615_v14 = vpop.eup %4614  ;;  %4632 = vrcp.f32 %v1688_v34  ;;  %v1690_v21 = vadd.f32 1.0, %v4613_v19  ;;  %v1649_v40 = vsub.f32 0.0, %v5667_v12  ;;  %v5675_v20 = vadd.f32 %v1633_v54, %v5613_v3 }
 0x297   :  { %4634 = vrcp.f32 %v1689_v26  ;;  %v1691_v56 = vadd.f32 1.0, %v4615_v14  ;;  %v1676_v22 = vmul.f32 1.442695, %v1648_v42  ;;  %v1650_v46 = vsub.f32 0.0, %v5671_v1 }
 0x298   :  { %v4617_v28 = vpop.eup %4616  ;;  %4636 = vrcp.f32 %v1690_v21  ;;  %v1678_v0 = vmul.f32 1.442695, %v1649_v40  ;;  %v1651_v49 = vsub.f32 0.0, %v5675_v20  ;;  %v4318_v21 = vld [vmem:[%s6172_s5 + $0x120] ss:$8 sps:$4 sm:$0xff]  }
 0x299   :  { %v4619_v13 = vpop.eup %4618  ;;  %4638 = vrcp.f32 %v1691_v56  ;;  %v1680_v61 = vmul.f32 1.442695, %v1650_v46  ;;  %v5693_v63 = vmul.f32 %v4617_v28, %v5616_v36  ;;  %v4323_v40 = vld [vmem:[%s6172_s5 + $0x134] ss:$8 sps:$4 sm:$0xff]   ;;  %v4321_v28 = vld [vmem:[%s6172_s5 + $0x130] ss:$8 sps:$4 sm:$0xff]  }
 0x29a   :  { %v4621_v23 = vpop.eup %4620  ;;  %4640 = vpow2.f32 %v1676_v22  ;;  %v1682_v6 = vmul.f32 1.442695, %v1651_v49  ;;  %v1717_v48 = vmul.f32 %v4619_v13, %v5619_v24  ;;  %v4315_v24 = vld [vmem:[%s6172_s5 + $0x110] ss:$8 sps:$4 sm:$0xff]   ;;  %v4326_v49 = vld [vmem:[%s6172_s5 + $0x144] ss:$8 sps:$4 sm:$0xff]  }
 0x29b   :  { %v4623_v31 = vpop.eup %4622  ;;  %v5680_v3 = vmul.f32 %v4621_v23, %v5623_v9  ;;  %4642 = vpow2.f32 %v1678_v0 }
 0x29c   :  { %v4625_v39 = vpop.eup %4624  ;;  %v5683_v33 = vmul.f32 %v4623_v31, %v5627_v50  ;;  %4644 = vpow2.f32 %v1680_v61  ;;  %v4312_v50 = vld [vmem:[%s6172_s5 + $0x100] ss:$8 sps:$4 sm:$0xff]   ;;  %v4329_v31 = vld [vmem:[%s6172_s5 + $0x154] ss:$8 sps:$4 sm:$0xff]  }
 0x29d   :  { %v4627_v53 = vpop.eup %4626  ;;  %4646 = vpow2.f32 %v1682_v6  ;;  %v1692_v25 = vadd.f32 1.0, %v4625_v39  ;;  %v4324_v6 = vld [vmem:[%s6172_s5 + $0x140] ss:$8 sps:$4 sm:$0xff]  }
 0x29e   :  { %v4629_v44 = vpop.eup %4628  ;;  %v3855_v52 = vpack.c.bf16 %v5683_v33, %v5680_v3  ;;  %v1693_v32 = vadd.f32 1.0, %v4627_v53 }
 0x29f   :  { %v4631_v55 = vpop.eup %4630  ;;  %v1694_v45 = vadd.f32 1.0, %v4629_v44 }
 0x2a0   :  { %v4633_v60 = vpop.eup %4632  ;;  %v3651_v17 = vcombine.low %v6186_v4, %v3855_v52  ;;  %v1695_v11 = vadd.f32 1.0, %v4631_v55  ;;  %v3652_v9 = vcombine.high %v6186_v4, %v3855_v52 }
 0x2a1   :  { %v4635_v38 = vpop.eup %4634  ;;  %v5696_v2 = vmul.f32 %v4633_v60, %v5632_v51  ;;  %4648 = vrcp.f32 %v1694_v45 }
 0x2a2   :  { %v4637_v16 = vpop.eup %4636  ;;  %v1721_v41 = vmul.f32 %v4635_v38, %v5635_v62  ;;  %4650 = vrcp.f32 %v1695_v11  ;;  %2472 = vmatprep.mubr.bf16.mxu0 %v3652_v9  ;;  %v4333_v38 = vld [vmem:[%s6172_s5 + $0x170] ss:$8 sps:$4 sm:$0xff]  }
 0x2a3   :  { %v4639_v30 = vpop.eup %4638  ;;  %v3890_v36 = vpack.c.bf16 %v5696_v2, %v5693_v63  ;;  %v5706_v51 = vmul.f32 %v4637_v16, %v5639_v58  ;;  %2473 = vmatmul.mubr.bf16.vlgmr.msra.gmra.mrb[32].mxu0 %v3651_v17  ;;  %4652 = vrcp.f32 %v1692_v25  ;;  %v4320_v58 = vld [vmem:[%s6172_s5 + $0x124] ss:$8 sps:$4 sm:$0xff]   ;;  %v4341_v16 = vld [vmem:[%s6172_s5 + $0x194] ss:$8 sps:$4 sm:$0xff]   ;;  %v4369_v2 = vld [vmem:[%s6172_s5 + $0x230] ss:$8 sps:$4 sm:$0xff]  }
 0x2a4   :  { %v4641_v47 = vpop.eup %4640  ;;  %v5709_v57 = vmul.f32 %v4639_v30, %v5643_v59  ;;  %2494 = vmatpush1.bf16.msra.mxu0 %v4312_v50  ;;  %v3891_v62 = vpack.c.bf16 %v1721_v41, %v1717_v48  ;;  %4654 = vrcp.f32 %v1693_v32  ;;  %v4330_v50 = vld [vmem:[%s6172_s5 + $0x160] ss:$8 sps:$4 sm:$0xff]   ;;  %v4338_v25 = vld [vmem:[%s6172_s5 + $0x184] ss:$8 sps:$4 sm:$0xff]   ;;  %v4339_v48 = vld [vmem:[%s6172_s5 + $0x190] ss:$8 sps:$4 sm:$0xff]  }
 0x2a5   :  { %v4643_v35 = vpop.eup %4642  ;;  %v3892_v34 = vpack.c.bf16 %v5706_v51, %v5680_v3  ;;  %v1696_v15 = vadd.f32 1.0, %v4641_v47  ;;  %2495 = vmatprep.subr.bf16.mxu0 %v4317_v5  ;;  %v4336_v5 = vld [vmem:[%s6172_s5 + $0x180] ss:$8 sps:$4 sm:$0xff]   ;;  %v4344_v41 = vld [vmem:[%s6172_s5 + $0x1a4] ss:$8 sps:$4 sm:$0xff]  }
 0x2a6   :  { %v4645_v19 = vpop.eup %4644  ;;  %v1697_v59 = vadd.f32 1.0, %v4643_v35  ;;  %v3893_v26 = vpack.c.bf16 %v5709_v57, %v5683_v33  ;;  %v4342_v32 = vld [vmem:[%s6172_s5 + $0x1a0] ss:$8 sps:$4 sm:$0xff]   ;;  %v4347_v30 = vld [vmem:[%s6172_s5 + $0x1b4] ss:$8 sps:$4 sm:$0xff]  }
 0x2a7   :  { %v4647_v42 = vpop.eup %4646  ;;  %4656 = vrcp.f32 %v1696_v15  ;;  %v1698_v54 = vadd.f32 1.0, %v4645_v19  ;;  %v4345_v47 = vld [vmem:[%s6172_s5 + $0x1b0] ss:$8 sps:$4 sm:$0xff]   ;;  %v4353_v35 = vld [vmem:[%s6172_s5 + $0x1d4] ss:$8 sps:$4 sm:$0xff]   ;;  %v4410_v3 = vld [vmem:[%s6174_s7 + $0x48] sm:$0xff]  }
 0x2a8   :  { %4658 = vrcp.f32 %v1697_v59  ;;  %v1699_v14 = vadd.f32 1.0, %v4647_v42  ;;  %2496 = vmatpush1.bf16.msra.mxu0 %v4315_v24  ;;  %v4350_v24 = vld [vmem:[%s6172_s5 + $0x1c4] ss:$8 sps:$4 sm:$0xff]   ;;  %v4351_v15 = vld [vmem:[%s6172_s5 + $0x1d0] ss:$8 sps:$4 sm:$0xff]  }
 0x2a9   :  { %4660 = vrcp.f32 %v1698_v54  ;;  %2497 = vmatprep.subr.bf16.mxu0 %v4320_v58  ;;  %v4356_v58 = vld [vmem:[%s6172_s5 + $0x1e4] ss:$8 sps:$4 sm:$0xff]   ;;  %v4354_v19 = vld [vmem:[%s6172_s5 + $0x1e0] ss:$8 sps:$4 sm:$0xff]   ;;  %v4359_v59 = vld [vmem:[%s6172_s5 + $0x1f4] ss:$8 sps:$4 sm:$0xff]  }
 0x2aa   :  { %4662 = vrcp.f32 %v1699_v14  ;;  %v4357_v42 = vld [vmem:[%s6172_s5 + $0x1f0] ss:$8 sps:$4 sm:$0xff]   ;;  %v4362_v54 = vld [vmem:[%s6172_s5 + $0x204] ss:$8 sps:$4 sm:$0xff]   ;;  %v4360_v14 = vld [vmem:[%s6172_s5 + $0x200] ss:$8 sps:$4 sm:$0xff]  }
 0x2ab   :  { %v4649_v56 = vpop.eup %4648  ;;  %v4371_v63 = vld [vmem:[%s6172_s5 + $0x234] ss:$8 sps:$4 sm:$0xff]  }
 0x2ac   :  { %v4651_v22 = vpop.eup %4650  ;;  %v5728_v46 = vmul.f32 %v4649_v56, %v5655_v18  ;;  %2498 = vmatpush1.bf16.msra.mxu0 %v4318_v21  ;;  %v4365_v21 = vld [vmem:[%s6172_s5 + $0x214] ss:$8 sps:$4 sm:$0xff]   ;;  %v4368_v56 = vld [vmem:[%s6172_s5 + $0x224] ss:$8 sps:$4 sm:$0xff]  }
 0x2ad   :  { %v5734_v0 = vmul.f32 %v4651_v22, %v5659_v27  ;;  %2499 = vmatprep.subr.bf16.mxu0 %v4323_v40  ;;  %v4653_v61 = vpop.eup %4652  ;;  %v4363_v40 = vld [vmem:[%s6172_s5 + $0x210] ss:$8 sps:$4 sm:$0xff]   ;;  %v4366_v22 = vld [vmem:[%s6172_s5 + $0x220] ss:$8 sps:$4 sm:$0xff]   ;;  %v4377_v33 = vld [vmem:[%s6172_s5 + $0x254] ss:$8 sps:$4 sm:$0xff]  }
 0x2ae   :  { %v3894_v13 = vpack.c.bf16 %v5728_v46, %v5706_v51  ;;  %v4655_v23 = vpop.eup %4654  ;;  %v5750_v53 = vmul.f32 %v4653_v61, %v5648_v37  ;;  %v4327_v37 = vld [vmem:[%s6172_s5 + $0x150] ss:$8 sps:$4 sm:$0xff]   ;;  %v4411_v51 = vld [vmem:[%s6174_s7 + $0x8] sm:$0xff]  }
 0x2af   :  { %v3895_v18 = vpack.c.bf16 %v5734_v0, %v5709_v57  ;;  %v1725_v55 = vmul.f32 %v4655_v23, %v5651_v43  ;;  %v4332_v43 = vld [vmem:[%s6172_s5 + $0x164] ss:$8 sps:$4 sm:$0xff]   ;;  %v4375_v57 = vld [vmem:[%s6172_s5 + $0x250] ss:$8 sps:$4 sm:$0xff]   ;;  %v4384_v23 = vld [vmem:[%s6172_s5 + $0x280] ss:$8 sps:$4 sm:$0xff]  }
 0x2b0   :  { %2500 = vmatpush1.bf16.msra.mxu0 %v4321_v28  ;;  %v4372_v28 = vld [vmem:[%s6172_s5 + $0x240] ss:$8 sps:$4 sm:$0xff]   ;;  %v4381_v61 = vld [vmem:[%s6172_s5 + $0x270] ss:$8 sps:$4 sm:$0xff]  }
 0x2b1   :  { %v4657_v27 = vpop.eup %4656  ;;  %2482 = vmatprep.mubr.bf16.mxu0 %v3895_v18  ;;  %2501 = vmatprep.subr.bf16.mxu0 %v4326_v49  ;;  %v4378_v49 = vld [vmem:[%s6172_s5 + $0x260] ss:$8 sps:$4 sm:$0xff]   ;;  %v4386_v18 = vld [vmem:[%s6172_s5 + $0x284] ss:$8 sps:$4 sm:$0xff]  }
 0x2b2   :  { %v4659_v39 = vpop.eup %4658  ;;  %v5753_v44 = vmul.f32 %v4657_v27, %v5664_v29  ;;  %2483 = vmatmul.mubr.bf16.gmra.mrb[36].mxu0 %v3894_v13  ;;  %v4383_v13 = vld [vmem:[%s6172_s5 + $0x274] ss:$8 sps:$4 sm:$0xff]   ;;  %v4387_v27 = vld [vmem:[%s6172_s5 + $0x290] ss:$8 sps:$4 sm:$0xff]  }
 0x2b3   :  { %v4661_v52 = vpop.eup %4660  ;;  %v1729_v45 = vmul.f32 %v4659_v39, %v5667_v12  ;;  %2525 = vmatprep.mubr.bf16.mxu0 %v3891_v62  ;;  %v4348_v62 = vld [vmem:[%s6172_s5 + $0x1c0] ss:$8 sps:$4 sm:$0xff]  }
 0x2b4   :  { %v4663_v60 = vpop.eup %4662  ;;  %v5758_v17 = vmul.f32 %v4661_v52, %v5671_v1  ;;  %2502 = vmatpush1.bf16.msra.mxu0 %v4324_v6  ;;  %v3896_v29 = vpack.c.bf16 %v5753_v44, %v5750_v53  ;;  %v4389_v6 = vld [vmem:[%s6172_s5 + $0x294] ss:$8 sps:$4 sm:$0xff]   ;;  %v4390_v39 = vld [vmem:[%s6172_s5 + $0x2a0] ss:$8 sps:$4 sm:$0xff]   ;;  %v4393_v44 = vld [vmem:[%s6172_s5 + $0x2b0] ss:$8 sps:$4 sm:$0xff]  }
 0x2b5   :  { %v5766_v11 = vmul.f32 %v4663_v60, %v5675_v20  ;;  %2503 = vmatprep.subr.bf16.mxu0 %v4329_v31  ;;  %v3897_v12 = vpack.c.bf16 %v1729_v45, %v1725_v55  ;;  %v4335_v20 = vld [vmem:[%s6172_s5 + $0x174] ss:$8 sps:$4 sm:$0xff]   ;;  %v4392_v31 = vld [vmem:[%s6172_s5 + $0x2a4] ss:$8 sps:$4 sm:$0xff]   ;;  %v4396_v55 = vld [vmem:[%s6172_s5 + $0x2c0] ss:$8 sps:$4 sm:$0xff]  }
 0x2b6   :  { %v3898_v1 = vpack.c.bf16 %v5758_v17, %v5728_v46  ;;  %v4395_v53 = vld [vmem:[%s6172_s5 + $0x2b4] ss:$8 sps:$4 sm:$0xff]   ;;  %v4398_v52 = vld [vmem:[%s6172_s5 + $0x2c4] ss:$8 sps:$4 sm:$0xff]   ;;  %v4399_v60 = vld [vmem:[%s6172_s5 + $0x2d0] ss:$8 sps:$4 sm:$0xff]  }
 0x2b7   :  { %v3899_v9 = vpack.c.bf16 %v5766_v11, %v5734_v0  ;;  %v4401_v45 = vld [vmem:[%s6172_s5 + $0x2d4] ss:$8 sps:$4 sm:$0xff]   ;;  %v4414_v0 = vld [vmem:[%s6174_s7 + $0x100] sm:$0xff]   ;;  %v4416_v11 = vld [vmem:[%s6174_s7 + $0x148] sm:$0xff]  }
 0x2b8   :  { %2504 = vmatpush1.bf16.msra.mxu0 %v4327_v37  ;;  %v4404_v37 = vld [vmem:[%s6172_s5 + $0x2e4] ss:$8 sps:$4 sm:$0xff]   ;;  %v4413_v46 = vld [vmem:[%s6174_s7 + $0x50] sm:$0xff]  }
 0x2b9   :  { %2505 = vmatprep.subr.bf16.mxu0 %v4332_v43  ;;  %v4407_v43 = vld [vmem:[%s6172_s5 + $0x2f4] ss:$8 sps:$4 sm:$0xff]  }
 0x2ba   :  { %v4415_v17 = vld [vmem:[%s6174_s7 + $0x10] sm:$0xff]  }
 0x2bc   :  { %2506 = vmatpush1.bf16.msra.mxu0 %v4330_v50  ;;  %v4408_v50 = vld [vmem:[%s6174_s7 + $0x40] sm:$0xff]  }
 0x2bd   :  { %2507 = vmatprep.subr.bf16.mxu0 %v4335_v20  ;;  %v4409_v20 = vld [vmem:[%s6174_s7] sm:$0xff]   ;;  %3904 = vmatprep.subr.bf16.mxu1 %v4408_v50 }
 0x2be   :  { %3905 = vmatpush3.bf16.msra.mxu1 %v4409_v20 }
 0x2bf   :  { %3906 = vmatprep.subr.bf16.mxu1 %v4410_v3 }
 0x2c0   :  { %2508 = vmatpush1.bf16.msra.mxu0 %v4333_v38  ;;  %v4419_v38 = vld [vmem:[%s6174_s7 + $0x18] sm:$0xff]  }
 0x2c1   :  { %2509 = vmatprep.subr.bf16.mxu0 %v4338_v25  ;;  %v4420_v25 = vld [vmem:[%s6174_s7 + $0x150] sm:$0xff]  }
 0x2c2   :  { %3907 = vmatpush3.bf16.msra.mxu1 %v4411_v51 }
 0x2c3   :  { %3908 = vmatprep.subr.bf16.mxu1 %v4413_v46 }
 0x2c4   :  { %2510 = vmatpush1.bf16.msra.mxu0 %v4336_v5  ;;  %v4421_v5 = vld [vmem:[%s6174_s7 + $0x60] sm:$0xff]  }
 0x2c5   :  { %2511 = vmatprep.subr.bf16.mxu0 %v4341_v16  ;;  %v4422_v16 = vld [vmem:[%s6174_s7 + $0x110] sm:$0xff]  }
 0x2c6   :  { %3909 = vmatpush3.bf16.msra.mxu1 %v4415_v17 }
 0x2c8   :  { %2512 = vmatpush1.bf16.msra.mxu0 %v4339_v48  ;;  %v4423_v48 = vld [vmem:[%s6174_s7 + $0x20] sm:$0xff]  }
 0x2c9   :  { %2513 = vmatprep.subr.bf16.mxu0 %v4344_v41  ;;  %v4424_v41 = vld [vmem:[%s6174_s7 + $0x158] sm:$0xff]  }
 0x2cc   :  { %2514 = vmatpush1.bf16.msra.mxu0 %v4342_v32  ;;  %v4425_v32 = vld [vmem:[%s6174_s7 + $0x68] sm:$0xff]  }
 0x2cd   :  { %2515 = vmatprep.subr.bf16.mxu0 %v4347_v30  ;;  %v4426_v30 = vld [vmem:[%s6174_s7 + $0x118] sm:$0xff]  }
 0x2d0   :  { %2516 = vmatpush1.bf16.msra.mxu0 %v4345_v47  ;;  %v4427_v47 = vld [vmem:[%s6174_s7 + $0x28] sm:$0xff]  }
 0x2d1   :  { %2517 = vmatprep.subr.bf16.mxu0 %v4350_v24  ;;  %v4428_v24 = vld [vmem:[%s6174_s7 + $0x160] sm:$0xff]  }
 0x2d4   :  { %2518 = vmatpush1.bf16.msra.mxu0 %v4348_v62  ;;  %v4429_v62 = vld [vmem:[%s6174_s7 + $0x70] sm:$0xff]  }
 0x2d5   :  { %2519 = vmatprep.subr.bf16.mxu0 %v4353_v35  ;;  %v4430_v35 = vld [vmem:[%s6174_s7 + $0x120] sm:$0xff]  }
 0x2d8   :  { %2520 = vmatpush1.bf16.msra.mxu0 %v4351_v15  ;;  %v4431_v15 = vld [vmem:[%s6174_s7 + $0x30] sm:$0xff]  }
 0x2d9   :  { %2521 = vmatprep.subr.bf16.mxu0 %v4356_v58  ;;  %v4432_v58 = vld [vmem:[%s6174_s7 + $0x168] sm:$0xff]  }
 0x2dc   :  { %2522 = vmatpush1.bf16.msra.mxu0 %v4354_v19  ;;  %v4433_v19 = vld [vmem:[%s6174_s7 + $0x78] sm:$0xff]  }
 0x2dd   :  { %2523 = vmatprep.subr.bf16.mxu0 %v4359_v59  ;;  %v4434_v59 = vld [vmem:[%s6174_s7 + $0x128] sm:$0xff]  }
 0x2e0   :  { %2524 = vmatpush1.bf16.msra.mxu0 %v4357_v42  ;;  %v4435_v42 = vld [vmem:[%s6174_s7 + $0x38] sm:$0xff]  }
 0x2e1   :  { %2546 = vmatprep.subr.bf16.mxu0 %v4362_v54  ;;  %v4436_v54 = vld [vmem:[%s6174_s7 + $0x170] sm:$0xff]  }
 0x2e3   :  { %2526 = vmatmul.mubr.bf16.vlgmr.msra.gmra.mrb[32].mxu0 %v3890_v36  ;;  %v4374_v36 = vld [vmem:[%s6172_s5 + $0x244] ss:$8 sps:$4 sm:$0xff]  }
 0x2e4   :  { %2535 = vmatprep.mubr.bf16.mxu0 %v3897_v12  ;;  %2547 = vmatpush1.bf16.msra.mxu0 %v4360_v14  ;;  %v4405_v12 = vld [vmem:[%s6172_s5 + $0x2f0] ss:$8 sps:$4 sm:$0xff]   ;;  %v4437_v14 = vld [vmem:[%s6174_s7 + $0xc0] sm:$0xff]  }
 0x2e5   :  { %2548 = vmatprep.subr.bf16.mxu0 %v4365_v21  ;;  %v4438_v21 = vld [vmem:[%s6174_s7 + $0x130] sm:$0xff]  }
 0x2e8   :  { %2549 = vmatpush1.bf16.msra.mxu0 %v4363_v40  ;;  %v4440_v40 = vld [vmem:[%s6174_s7 + $0x178] sm:$0xff]  }
 0x2e9   :  { %2550 = vmatprep.subr.bf16.mxu0 %v4368_v56  ;;  %v4442_v56 = vld [vmem:[%s6174_s7 + $0x138] sm:$0xff]  }
 0x2eb   :  { %2536 = vmatmul.mubr.bf16.gmra.mrb[36].mxu0 %v3896_v29  ;;  %v4402_v29 = vld [vmem:[%s6172_s5 + $0x2e0] ss:$8 sps:$4 sm:$0xff]  }
 0x2ec   :  { %2551 = vmatpush1.bf16.msra.mxu0 %v4366_v22  ;;  %2578 = vmatprep.mubr.bf16.mxu0 %v3893_v26  ;;  %v4380_v26 = vld [vmem:[%s6172_s5 + $0x264] ss:$8 sps:$4 sm:$0xff]   ;;  %v1924_v22 = vld [vmem:[%s6175_s6] sm:$0x3] }
 0x2ed   :  { %2552 = vmatprep.subr.bf16.mxu0 %v4371_v63  ;;  %v1929_v63 = vrot.slane %v1924_v22, %v4999_v8 }
 0x2f0   :  { %2553 = vmatpush1.bf16.msra.mxu0 %v4369_v2  ;;  %v1933_v2 = vrot.slane %v1924_v22, %v5005_v10  ;;  %v4439_v22 = vld [vmem:[%s6174_s7 + $0x80] sm:$0xff]  }
 0x2f1   :  { %2554 = vmatprep.subr.bf16.mxu0 %v4374_v36 }
 0x2f4   :  { %2555 = vmatpush1.bf16.msra.mxu0 %v4372_v28 }
 0x2f5   :  { %2556 = vmatprep.subr.bf16.mxu0 %v4377_v33 }
 0x2f8   :  { %2557 = vmatpush1.bf16.msra.mxu0 %v4375_v57 }
 0x2f9   :  { %2558 = vmatprep.subr.bf16.mxu0 %v4380_v26 }
 0x2fc   :  { %2559 = vmatpush1.bf16.msra.mxu0 %v4378_v49 }
 0x2fd   :  { %2560 = vmatprep.subr.bf16.mxu0 %v4383_v13 }
 0x300   :  { %2561 = vmatpush1.bf16.msra.mxu0 %v4381_v61 }
 0x301   :  { %2562 = vmatprep.subr.bf16.mxu0 %v4386_v18 }
 0x304   :  { %2563 = vmatpush1.bf16.msra.mxu0 %v4384_v23 }
 0x305   :  { %2564 = vmatprep.subr.bf16.mxu0 %v4389_v6 }
 0x308   :  { %2565 = vmatpush1.bf16.msra.mxu0 %v4387_v27 }
 0x309   :  { %2566 = vmatprep.subr.bf16.mxu0 %v4392_v31 }
 0x30c   :  { %2567 = vmatpush1.bf16.msra.mxu0 %v4390_v39 }
 0x30d   :  { %2568 = vmatprep.subr.bf16.mxu0 %v4395_v53 }
 0x310   :  { %2569 = vmatpush1.bf16.msra.mxu0 %v4393_v44 }
 0x311   :  { %2570 = vmatprep.subr.bf16.mxu0 %v4398_v52 }
 0x314   :  { %2571 = vmatpush1.bf16.msra.mxu0 %v4396_v55 }
 0x315   :  { %2572 = vmatprep.subr.bf16.mxu0 %v4401_v45 }
 0x318   :  { %2573 = vmatpush1.bf16.msra.mxu0 %v4399_v60 }
 0x319   :  { %2574 = vmatprep.subr.bf16.mxu0 %v4404_v37 }
 0x31c   :  { %2575 = vmatpush1.bf16.msra.mxu0 %v4402_v29 }
 0x31d   :  { %2576 = vmatprep.subr.bf16.mxu0 %v4407_v43 }
 0x320   :  { %2577 = vmatpush1.bf16.msra.mxu0 %v4405_v12 }
 0x323   :  { %2579 = vmatmul.mubr.bf16.vlgmr.msra.gmra.mrb[32].mxu0 %v3892_v34  ;;  %v4412_v34 = vld [vmem:[%s6174_s7 + $0x140] sm:$0xff]  }
 0x324   :  { %2588 = vmatprep.mubr.bf16.mxu0 %v3899_v9  ;;  %3948 = vmatprep.subr.bf16.mxu0 %v4412_v34  ;;  %v4418_v9 = vld [vmem:[%s6174_s7 + $0x108] sm:$0xff]  }
 0x325   :  { %3949 = vmatpush3.bf16.msra.mxu0 %v4414_v0 }
 0x326   :  { %3950 = vmatprep.subr.bf16.mxu0 %v4416_v11 }
 0x329   :  { %3951 = vmatpush3.bf16.msra.mxu0 %v4418_v9 }
 0x32a   :  { %3952 = vmatprep.subr.bf16.mxu0 %v4420_v25 }
 0x32b   :  { %2589 = vmatmul.mubr.bf16.gmra.mrb[36].mxu0 %v3898_v1  ;;  %v4417_v1 = vld [vmem:[%s6174_s7 + $0x58] sm:$0xff]  }
 0x32c   :  { %3910 = vmatprep.subr.bf16.mxu1 %v4417_v1 }
 0x32d   :  { %3911 = vmatpush3.bf16.msra.mxu1 %v4419_v38  ;;  %3953 = vmatpush3.bf16.msra.mxu0 %v4422_v16 }
 0x32e   :  { %3912 = vmatprep.subr.bf16.mxu1 %v4421_v5  ;;  %3954 = vmatprep.subr.bf16.mxu0 %v4424_v41 }
 0x331   :  { %3913 = vmatpush3.bf16.msra.mxu1 %v4423_v48  ;;  %3955 = vmatpush3.bf16.msra.mxu0 %v4426_v30 }
 0x332   :  { %3914 = vmatprep.subr.bf16.mxu1 %v4425_v32  ;;  %3956 = vmatprep.subr.bf16.mxu0 %v4428_v24 }
 0x335   :  { %3915 = vmatpush3.bf16.msra.mxu1 %v4427_v47  ;;  %3957 = vmatpush3.bf16.msra.mxu0 %v4430_v35 }
 0x336   :  { %3916 = vmatprep.subr.bf16.mxu1 %v4429_v62  ;;  %3958 = vmatprep.subr.bf16.mxu0 %v4432_v58 }
 0x339   :  { %3917 = vmatpush3.bf16.msra.mxu1 %v4431_v15  ;;  %3959 = vmatpush3.bf16.msra.mxu0 %v4434_v59 }
 0x33a   :  { %3918 = vmatprep.subr.bf16.mxu1 %v4433_v19  ;;  %3960 = vmatprep.subr.bf16.mxu0 %v4436_v54 }
 0x33d   :  { %3919 = vmatpush3.bf16.msra.mxu1 %v4435_v42  ;;  %3961 = vmatpush3.bf16.msra.mxu0 %v4438_v21 }
 0x33e   :  { %3926 = vmatprep.subr.bf16.mxu1 %v4437_v14  ;;  %3962 = vmatprep.subr.bf16.mxu0 %v4440_v40 }
 0x341   :  { %3963 = vmatpush3.bf16.msra.mxu0 %v4442_v56 }
 0x3f6   :  { %v2580_v36 = vpop.f32.mrb[32].mxu0 }
 0x3f7   :  { %v6047_v28 = vadd.f32 %v2580_v36, %v1929_v63  ;;  %v2582_v33 = vpop.f32.mrb[33].mxu0 }
 0x3f8   :  { %v6049_v57 = vadd.f32 %v2582_v33, %v1933_v2  ;;  %v2584_v26 = vpop.f32.mrb[34].mxu0  ;;  %v4441_v33 = vld [vmem:[%s6174_s7 + $0xc8] sm:$0xff]  }
 0x3f9   :  { %v2599_v49 = vsub.f32 0.0, %v6047_v28  ;;  %v4010_v13 = vadd.f32 %v2584_v26, %v1929_v63  ;;  %v2586_v61 = vpop.f32.mrb[35].mxu0 }
 0x3fa   :  { %v2600_v18 = vsub.f32 0.0, %v6049_v57  ;;  %v4011_v23 = vadd.f32 %v2586_v61, %v1933_v2 }
 0x3fb   :  { %v2607_v6 = vmul.f32 1.442695, %v2599_v49  ;;  %v2601_v27 = vsub.f32 0.0, %v4010_v13 }
 0x3fc   :  { %v2609_v31 = vmul.f32 1.442695, %v2600_v18  ;;  %v2602_v39 = vsub.f32 0.0, %v4011_v23 }
 0x3fd   :  { %4664 = vpow2.f32 %v2607_v6  ;;  %v2611_v10 = vmul.f32 1.442695, %v2601_v27 }
 0x3fe   :  { %4666 = vpow2.f32 %v2609_v31  ;;  %v2613_v53 = vmul.f32 1.442695, %v2602_v39  ;;  %v2590_v44 = vpop.f32.mrb[36].mxu0  ;;  %v4444_v31 = vld [vmem:[%s6174_s7 + $0xd0] sm:$0xff]  }
 0x3ff   :  { %4668 = vpow2.f32 %v2611_v10  ;;  %v4012_v52 = vadd.f32 %v2590_v44, %v1929_v63  ;;  %v2592_v55 = vpop.f32.mrb[37].mxu0  ;;  %v4445_v39 = vld [vmem:[%s6174_s7 + $0x90] sm:$0xff]   ;;  %v4446_v10 = vld [vmem:[%s6174_s7 + $0xd8] sm:$0xff]   ;;  %v4448_v44 = vld [vmem:[%s6174_s7 + $0xe0] sm:$0xff]  }
 0x400   :  { %4670 = vpow2.f32 %v2613_v53  ;;  %v4013_v45 = vadd.f32 %v2592_v55, %v1933_v2  ;;  %v2594_v60 = vpop.f32.mrb[38].mxu0  ;;  %v4447_v53 = vld [vmem:[%s6174_s7 + $0x98] sm:$0xff]   ;;  %v4450_v55 = vld [vmem:[%s6174_s7 + $0xe8] sm:$0xff]  }
 0x401   :  { %v2603_v37 = vsub.f32 0.0, %v4012_v52  ;;  %v4014_v29 = vadd.f32 %v2594_v60, %v1929_v63  ;;  %v2596_v43 = vpop.f32.mrb[39].mxu0  ;;  %v4452_v60 = vld [vmem:[%s6174_s7 + $0xf0] sm:$0xff]  }
 0x402   :  { %v2604_v12 = vsub.f32 0.0, %v4013_v45  ;;  %v4015_v50 = vadd.f32 %v2596_v43, %v1933_v2  ;;  %v4455_v43 = vld [vmem:[%s6174_s7 + $0xb8] sm:$0xff]  }
 0x403   :  { %v2615_v20 = vmul.f32 1.442695, %v2603_v37  ;;  %v2605_v3 = vsub.f32 0.0, %v4014_v29  ;;  %v4453_v37 = vld [vmem:[%s6174_s7 + $0xb0] sm:$0xff]  }
 0x404   :  { %v2617_v51 = vmul.f32 1.442695, %v2604_v12  ;;  %v2606_v34 = vsub.f32 0.0, %v4015_v50  ;;  %v4456_v12 = vld [vmem:[%s6176_s9 + $0x40] sm:$0xff]  }
 0x405   :  { %4672 = vpow2.f32 %v2615_v20  ;;  %v2619_v46 = vmul.f32 1.442695, %v2605_v3  ;;  %v4458_v20 = vld [vmem:[%s6176_s9 + $0x48] sm:$0xff]  }
 0x406   :  { %4674 = vpow2.f32 %v2617_v51  ;;  %v2621_v0 = vmul.f32 1.442695, %v2606_v34  ;;  %v4459_v3 = vld [vmem:[%s6176_s9 + $0x8] sm:$0xff]   ;;  %v4460_v51 = vld [vmem:[%s6176_s9 + $0x50] sm:$0xff]  }
 0x407   :  { %v4665_v17 = vpop.eup %4664  ;;  %4676 = vpow2.f32 %v2619_v46  ;;  %v4461_v34 = vld [vmem:[%s6176_s9 + $0x10] sm:$0xff]   ;;  %v4462_v46 = vld [vmem:[%s6176_s9 + $0x58] sm:$0xff]  }
 0x408   :  { %v4667_v11 = vpop.eup %4666  ;;  %4678 = vpow2.f32 %v2621_v0  ;;  %v2623_v5 = vadd.f32 1.0, %v4665_v17  ;;  %v4463_v0 = vld [vmem:[%s6176_s9 + $0x18] sm:$0xff]   ;;  %v4464_v17 = vld [vmem:[%s6176_s9 + $0x60] sm:$0xff]  }
 0x409   :  { %v4669_v1 = vpop.eup %4668  ;;  %v2624_v16 = vadd.f32 1.0, %v4667_v11  ;;  %v4465_v11 = vld [vmem:[%s6176_s9 + $0x20] sm:$0xff]  }
 0x40a   :  { %v4671_v9 = vpop.eup %4670  ;;  %v2625_v38 = vadd.f32 1.0, %v4669_v1  ;;  %v4466_v1 = vld [vmem:[%s6176_s9 + $0x68] sm:$0xff]  }
 0x40b   :  { %v2626_v25 = vadd.f32 1.0, %v4671_v9  ;;  %v4467_v9 = vld [vmem:[%s6176_s9 + $0x28] sm:$0xff]  }
 0x40c   :  { %4680 = vrcp.f32 %v2625_v38  ;;  %v4468_v38 = vld [vmem:[%s6176_s9 + $0x70] sm:$0xff]  }
 0x40d   :  { %4682 = vrcp.f32 %v2626_v25  ;;  %v4469_v25 = vld [vmem:[%s6176_s9 + $0x30] sm:$0xff]  }
 0x40e   :  { %4684 = vrcp.f32 %v2623_v5  ;;  %v4470_v5 = vld [vmem:[%s6176_s9 + $0x78] sm:$0xff]  }
 0x40f   :  { %v4673_v48 = vpop.eup %4672  ;;  %4686 = vrcp.f32 %v2624_v16  ;;  %v4471_v16 = vld [vmem:[%s6176_s9 + $0x38] sm:$0xff]  }
 0x410   :  { %v4675_v41 = vpop.eup %4674  ;;  %v2627_v32 = vadd.f32 1.0, %v4673_v48 }
 0x411   :  { %v4677_v30 = vpop.eup %4676  ;;  %v2628_v47 = vadd.f32 1.0, %v4675_v41 }
 0x412   :  { %v4679_v24 = vpop.eup %4678  ;;  %4688 = vrcp.f32 %v2627_v32  ;;  %v2629_v62 = vadd.f32 1.0, %v4677_v30 }
 0x413   :  { %4690 = vrcp.f32 %v2628_v47  ;;  %v2630_v35 = vadd.f32 1.0, %v4679_v24 }
 0x414   :  { %4692 = vrcp.f32 %v2629_v62 }
 0x415   :  { %4694 = vrcp.f32 %v2630_v35 }
 0x416   :  { %v4681_v15 = vpop.eup %4680 }
 0x417   :  { %v4683_v58 = vpop.eup %4682  ;;  %v2641_v19 = vmul.f32 %v4681_v15, %v4010_v13 }
 0x418   :  { %v2642_v59 = vmul.f32 %v4683_v58, %v4011_v23  ;;  %v4685_v42 = vpop.eup %4684 }
 0x419   :  { %v4687_v14 = vpop.eup %4686  ;;  %v2639_v2 = vmul.f32 %v4685_v42, %v6047_v28  ;;  %v4443_v28 = vld [vmem:[%s6174_s7 + $0x88] sm:$0xff]   ;;  %v3763_v42 = vld [vmem:[%s6177_s8] ss:$0 sm:$0xff] }
 0x41a   :  { %v3863_v54 = vpack.c.bf16 %v2642_v59, %v2641_v19  ;;  %v2640_v49 = vmul.f32 %v4687_v14, %v6049_v57 }
 0x41c   :  { %v4689_v21 = vpop.eup %4688  ;;  %v3764_v40 = vcombine.low %v6186_v4, %v3863_v54  ;;  %v3765_v56 = vcombine.high %v6186_v4, %v3863_v54 }
 0x41d   :  { %v4691_v63 = vpop.eup %4690  ;;  %v2643_v36 = vmul.f32 %v4689_v21, %v4012_v52  ;;  %v4449_v52 = vld [vmem:[%s6174_s7 + $0xa0] sm:$0xff]  }
 0x41e   :  { %v4693_v26 = vpop.eup %4692  ;;  %v2644_v13 = vmul.f32 %v4691_v63, %v4013_v45  ;;  %3134 = vmatprep.mubr.bf16.mxu1 %v3765_v56  ;;  %v4451_v45 = vld [vmem:[%s6174_s7 + $0xa8] sm:$0xff]  }
 0x41f   :  { %v4695_v61 = vpop.eup %4694  ;;  %v3900_v18 = vpack.c.bf16 %v2643_v36, %v2639_v2  ;;  %v2645_v4 = vmul.f32 %v4693_v26, %v4014_v29  ;;  %3135 = vmatmul.mubr.bf16.vlgmr.msra.gmra.mrb[16].mxu1 %v3764_v40  ;;  %v4454_v29 = vld [vmem:[%s6174_s7 + $0xf8] sm:$0xff]  }
 0x420   :  { %v2646_v23 = vmul.f32 %v4695_v61, %v4015_v50  ;;  %3927 = vmatpush3.bf16.msra.mxu1 %v4439_v22  ;;  %v3901_v6 = vpack.c.bf16 %v2644_v13, %v2640_v49  ;;  %v4457_v50 = vld [vmem:[%s6176_s9] sm:$0xff]  }
 0x421   :  { %v3902_v27 = vpack.c.bf16 %v2645_v4, %v2641_v19  ;;  %3928 = vmatprep.subr.bf16.mxu1 %v4441_v33 }
 0x422   :  { %3175 = vmatprep.mubr.bf16.mxu1 %v3901_v6  ;;  %v3903_v57 = vpack.c.bf16 %v2646_v23, %v2642_v59 }
 0x424   :  { %3929 = vmatpush3.bf16.msra.mxu1 %v4443_v28  ;;  %3216 = vmatprep.mubr.bf16.mxu0 %v3903_v57 }
 0x425   :  { %3217 = vmatmul.mubr.bf16.vlgmr.msra.gmra.mrb[40].mxu0 %v3902_v27  ;;  %3930 = vmatprep.subr.bf16.mxu1 %v4444_v31 }
 0x428   :  { %3931 = vmatpush3.bf16.msra.mxu1 %v4445_v39 }
 0x429   :  { %3932 = vmatprep.subr.bf16.mxu1 %v4446_v10 }
 0x42c   :  { %3933 = vmatpush3.bf16.msra.mxu1 %v4447_v53 }
 0x42d   :  { %3934 = vmatprep.subr.bf16.mxu1 %v4448_v44 }
 0x430   :  { %3935 = vmatpush3.bf16.msra.mxu1 %v4449_v52  ;;  %v18_v52 = vstv %s6178_s12 }
 0x431   :  { %3936 = vmatprep.subr.bf16.mxu1 %v4450_v55  ;;  %19 = vst [vmem:[#allocation5] sm:$0x1] %v18_v52 }
 0x434   :  { %3937 = vmatpush3.bf16.msra.mxu1 %v4451_v45  ;;  %v3820_v45 = vld [vmem:[%s6179_s10] ss:$0 sm:$0xff] }
 0x435   :  { %3938 = vmatprep.subr.bf16.mxu1 %v4452_v60 }
 0x438   :  { %3939 = vmatpush3.bf16.msra.mxu1 %v4453_v37 }
 0x439   :  { %3940 = vmatprep.subr.bf16.mxu1 %v4454_v29 }
 0x43c   :  { %3941 = vmatpush3.bf16.msra.mxu1 %v4455_v43 }
 0x43d   :  { %3970 = vmatprep.subr.bf16.mxu1 %v4456_v12 }
 0x43f   :  { %3176 = vmatmul.mubr.bf16.vlgmr.msra.gmra.mrb[20].mxu1 %v3900_v18 }
 0x440   :  { %3971 = vmatpush3.bf16.msra.mxu1 %v4457_v50 }
 0x441   :  { %3972 = vmatprep.subr.bf16.mxu1 %v4458_v20 }
 0x444   :  { %3973 = vmatpush3.bf16.msra.mxu1 %v4459_v3 }
 0x445   :  { %3974 = vmatprep.subr.bf16.mxu1 %v4460_v51 }
 0x448   :  { %3975 = vmatpush3.bf16.msra.mxu1 %v4461_v34 }
 0x449   :  { %3976 = vmatprep.subr.bf16.mxu1 %v4462_v46  ;;  %v3837_v46 = vld [vmem:[%s6180_s11] ss:$0 sm:$0xff] }
 0x44c   :  { %3977 = vmatpush3.bf16.msra.mxu1 %v4463_v0 }
 0x44d   :  { %3978 = vmatprep.subr.bf16.mxu1 %v4464_v17 }
 0x450   :  { %3979 = vmatpush3.bf16.msra.mxu1 %v4465_v11 }
 0x451   :  { %3980 = vmatprep.subr.bf16.mxu1 %v4466_v1  ;;  %v3438_v1 = vld [vmem:[#allocation5] sm:$0x1] }
 0x454   :  { %3981 = vmatpush3.bf16.msra.mxu1 %v4467_v9 }
 0x455   :  { %3982 = vmatprep.subr.bf16.mxu1 %v4468_v38  ;;  %v6187_v38 = vlaneseq }
 0x458   :  { %3983 = vmatpush3.bf16.msra.mxu1 %v4469_v25  ;;  %v3451_v25 = vand.u32 127, %v6187_v38 }
 0x459   :  { %3984 = vmatprep.subr.bf16.mxu1 %v4470_v5 }
 0x45c   :  { %3985 = vmatpush3.bf16.msra.mxu1 %v4471_v16  ;;  %v3454_v16 = vsub.s32 %v3451_v25, %v4996_v7 }
 0x4f2   :  { %v3920_v48 = vpop.f32.mrb[16].mxu1 }
 0x4f3   :  { %v3921_v41 = vpop.f32.mrb[17].mxu1 }
 0x4f4   :  { %v3922_v32 = vadd.f32 %v3921_v41, %v3920_v48  ;;  %v3923_v30 = vpop.f32.mrb[18].mxu1 }
 0x4f5   :  { %v3924_v47 = vpop.f32.mrb[19].mxu1 }
 0x4f6   :  { %v3925_v24 = vadd.f32 %v3924_v47, %v3923_v30  ;;  %v3137_v21 = vadd.f32 %v3922_v32, %v3763_v42 }
 0x4f8   :  { %v3964_v62 = vpop.f32.mrb[40].mxu0  ;;  %v3140_v63 = vadd.f32 %v3925_v24, %v3763_v42 }
 0x4f9   :  { %v3965_v35 = vpop.f32.mrb[41].mxu0 }
 0x4fa   :  { %v3966_v15 = vadd.f32 %v3965_v35, %v3964_v62  ;;  %v3967_v58 = vpop.f32.mrb[42].mxu0 }
 0x4fb   :  { %v3968_v19 = vpop.f32.mrb[43].mxu0 }
 0x4fc   :  { %v3969_v59 = vadd.f32 %v3968_v19, %v3967_v58 }
 0x512   :  { %v3942_v54 = vpop.f32.mrb[20].mxu1 }
 0x513   :  { %v3943_v14 = vpop.f32.mrb[21].mxu1 }
 0x514   :  { %v3944_v40 = vadd.f32 %v3943_v14, %v3942_v54  ;;  %v3945_v56 = vpop.f32.mrb[22].mxu1 }
 0x515   :  { %v3946_v22 = vpop.f32.mrb[23].mxu1 }
 0x516   :  { %v3178_v2 = vadd.f32 %v3944_v40, %v3137_v21  ;;  %v3947_v36 = vadd.f32 %v3946_v22, %v3945_v56 }
 0x518   :  { %v3219_v33 = vadd.f32 %v3966_v15, %v3178_v2  ;;  %v3181_v26 = vadd.f32 %v3947_v36, %v3140_v63 }
 0x51a   :  { %v3225_v49 = vsub.f32 0.0, %v3219_v33  ;;  %v3222_v13 = vadd.f32 %v3969_v59, %v3181_v26 }
 0x51c   :  { %v3227_v61 = vmul.f32 1.442695, %v3225_v49  ;;  %v3226_v18 = vsub.f32 0.0, %v3222_v13 }
 0x51e   :  { %4696 = vpow2.f32 %v3227_v61  ;;  %v3229_v4 = vmul.f32 1.442695, %v3226_v18 }
 0x520   :  { %4698 = vpow2.f32 %v3229_v4 }
 0x528   :  { %v4697_v23 = vpop.eup %4696 }
 0x529   :  { %v3231_v6 = vadd.f32 1.0, %v4697_v23 }
 0x52a   :  { %v4699_v28 = vpop.eup %4698 }
 0x52b   :  { %4700 = vrcp.f32 %v3231_v6  ;;  %v3232_v27 = vadd.f32 1.0, %v4699_v28 }
 0x52d   :  { %4702 = vrcp.f32 %v3232_v27 }
 0x535   :  { %v4701_v31 = vpop.eup %4700 }
 0x536   :  { %v3235_v39 = vmul.f32 %v4701_v31, %v3219_v33 }
 0x537   :  { %v4703_v57 = vpop.eup %4702 }
 0x538   :  { %v3236_v10 = vmul.f32 %v4703_v57, %v3222_v13  ;;  %v3866_v44 = vpack.c.bf16 %v3235_v39, %v3235_v39 }
 0x53a   :  { %v3867_v53 = vpack.c.bf16 %v3236_v10, %v3236_v10 }
 0x53c   :  { %3412 = vmatprep.mubr.bf16.mxu1 %v3867_v53 }
 0x53d   :  { %3413 = vmatmul.mubr.bf16.vlgmr.msra.gmra.mrb[24].mxu1 %v3866_v44 }
 0x610   :  { %v3986_v55 = vpop.f32.mrb[24].mxu1 }
 0x611   :  { %v3987_v60 = vpop.f32.mrb[25].mxu1 }
 0x612   :  { %v3988_v37 = vadd.f32 %v3987_v60, %v3986_v55  ;;  %v3989_v29 = vpop.f32.mrb[26].mxu1 }
 0x613   :  { %v3990_v43 = vpop.f32.mrb[27].mxu1 }
 0x614   :  { %v3415_v12 = vadd.f32 %v3988_v37, %v3820_v45 }
 0x616   :  { %v3420_v50 = vsub.f32 0.0, %v3415_v12 }
 0x618   :  { %v3421_v20 = vmul.f32 1.442695, %v3420_v50 }
 0x61a   :  { %4704 = vpow2.f32 %v3421_v20 }
 0x624   :  { %v4705_v3 = vpop.eup %4704 }
 0x625   :  { %v3423_v51 = vadd.f32 1.0, %v4705_v3 }
 0x627   :  { %4706 = vrcp.f32 %v3423_v51 }
 0x631   :  { %v4707_v34 = vpop.eup %4706 }
 0x632   :  { %v3425_v0 = vmul.f32 %v4707_v34, %v3415_v12 }
 0x634   :  { %v3433_v17 = vmul.f32 %v3837_v46, %v3425_v0 }
 0x636   :  { %v3435_v11 = vsel %vm3434_vm1, %v3433_v17, 0.0 }
 0x637   :  { %3436 = vadd.xlane.f32.xlu0 %v3435_v11 }
 0x64d   :  { %3441 = vperm.xlu0 %4065, %v3438_v1  }
 0x6c4   :  { %v3437_v9 = vpop.xlane.xlu0 %3436 }
 0x6cc   :  { %v3442_v5 = vpop.permute.xlu0 %3441 }
 0x6cd   :  { %v3447_v48 = vrot.slane %v3442_v5, %v4999_v8 }
 0x6cf   :  { %v3448_v41 = vadd.f32 %v3447_v48, %v3437_v9 }
 0x6d1   :  { %v3455_v32 = vrot.slane %v3448_v41, %v3454_v16 }
 0x6d3   :  { %3458 = vst.msk [vmem:[%s6181_s13] sm:$0x1] %vm3457_vm2, %v3455_v32 }

</bundles_post_ra>
